<compile_context>
chip_gen: v5e
topology: v5e:2x2
jax: 0.10.0
libtpu: 0.0.40
codegen_flags: <defaults>
</compile_context>

<pallas_src>
import jax
import jax.numpy as jnp
from jax.experimental import pallas as pl
from jax.experimental.pallas import tpu as pltpu

EPS = 1e-3


def _bn_relu_kernel(x_ref, gb_ref, o_ref):
    # x_ref / o_ref: (N, tc, S) block — channels on the sublane axis,
    # flattened H*W on the lane axis.  gb_ref: (tc, 2), col 0 = gamma, col 1 = beta.
    x = x_ref[...]
    gb = gb_ref[...]
    gamma = gb[:, 0:1][None]          # (1, tc, 1)
    beta = gb[:, 1:2][None]           # (1, tc, 1)

    n = x.shape[0] * x.shape[2]
    inv_n = jnp.float32(1.0 / n)

    # Pass 1: per-channel mean (reduce batch axis with cheap vreg adds, then a
    # cross-lane XLU reduce).
    s0 = jnp.sum(x, axis=0)                                   # (tc, S)
    mean = (jnp.sum(s0, axis=-1, keepdims=True) * inv_n)[None]  # (1, tc, 1)

    # Pass 2: biased variance on centered values (matches PyTorch numerics,
    # avoids catastrophic cancellation of the one-pass formula).
    xc = x - mean
    v0 = jnp.sum(xc * xc, axis=0)                             # (tc, S)
    var = (jnp.sum(v0, axis=-1, keepdims=True) * inv_n)[None]  # (1, tc, 1)

    inv = jax.lax.rsqrt(var + EPS)
    a = inv * gamma                                            # fold affine scale
    # y = (x - mean) * a + beta; reuse the already-centered xc.
    o_ref[...] = jnp.maximum(xc * a + beta, 0.0)


def batchnorm_relu(x_nchw, gamma, beta, *, channel_tile=None):
    """x_nchw: (N, C, H, W) float32; gamma/beta: (C,) float32."""
    N, C, H, W = x_nchw.shape
    if channel_tile is None:
        channel_tile = C          # grid=(1,): step overhead dominates at this size
    assert C % channel_tile == 0, "channel_tile must divide C"
    assert channel_tile == C or channel_tile % 8 == 0, \
        "channel_tile must be a multiple of 8 (f32 sublane) or equal to C"

    S = H * W
    x3 = x_nchw.reshape(N, C, S)              # pure metadata reshape for any N
    gb = jnp.stack([gamma, beta], axis=-1)    # (C, 2): one small input, one DMA

    grid = (C // channel_tile,)
    out = pl.pallas_call(
        _bn_relu_kernel,
        out_shape=jax.ShapeDtypeStruct((N, C, S), jnp.float32),
        grid_spec=pltpu.PrefetchScalarGridSpec(
            num_scalar_prefetch=0,
            grid=grid,
            in_specs=[
                pl.BlockSpec((N, channel_tile, S), lambda i: (0, i, 0)),
                pl.BlockSpec((channel_tile, 2), lambda i: (i, 0)),
            ],
            out_specs=pl.BlockSpec((N, channel_tile, S), lambda i: (0, i, 0)),
        ),
        compiler_params=pltpu.CompilerParams(
            dimension_semantics=("arbitrary",),
        ),
    )(x3, gb)

    return out.reshape(N, C, H, W)            # pure reshape back, no copy


def reference_bn_relu(x_nchw, gamma, beta):
    mean = jnp.mean(x_nchw, axis=(0, 2, 3), keepdims=True)
    var = jnp.mean((x_nchw - mean) ** 2, axis=(0, 2, 3), keepdims=True)
    y = (x_nchw - mean) * jax.lax.rsqrt(var + EPS)
    y = y * gamma.reshape(1, -1, 1, 1) + beta.reshape(1, -1, 1, 1)
    return jnp.maximum(y, 0.0)


if __name__ == "__main__":
    key = jax.random.PRNGKey(0)
    kx, kg, kb = jax.random.split(key, 3)

    # Shape matches the module: BatchNorm2d(144) on a (1, 144, 28, 28) input.
    N, C, H, W = 1, 144, 28, 28
    x = jax.random.normal(kx, (N, C, H, W), dtype=jnp.float32)

    # PyTorch default init is gamma=1, beta=0; perturb slightly so the affine
    # path is exercised.
    gamma = 1.0 + 0.1 * jax.random.normal(kg, (C,), dtype=jnp.float32)
    beta = 0.1 * jax.random.normal(kb, (C,), dtype=jnp.float32)

    out = jax.block_until_ready(batchnorm_relu(x, gamma, beta))
    ref = reference_bn_relu(x, gamma, beta)
    assert out.shape == (N, C, H, W)
    assert jnp.max(jnp.abs(out - ref)) < 1e-4, "mismatch vs reference (N=1)"

    # Also exercise the general N>1 path (3-D blocks, no HBM transpose).
    x2 = jax.random.normal(jax.random.PRNGKey(1), (2, C, 8, 8), dtype=jnp.float32)
    out2 = jax.block_until_ready(batchnorm_relu(x2, gamma, beta))
    ref2 = reference_bn_relu(x2, gamma, beta)
    assert jnp.max(jnp.abs(out2 - ref2)) < 1e-4, "mismatch vs reference (N=2)"

    print("KERNEL_OK")
</pallas_src>

<mosaic_0001>
module attributes {stable_mosaic.version = 11 : i64} {
  func.func @_bn_relu_kernel(%arg0: i32, %arg1: memref<1x144x784xf32, #tpu.memory_space<vmem>>, %arg2: memref<144x2xf32, #tpu.memory_space<vmem>>, %arg3: memref<1x144x784xf32, #tpu.memory_space<vmem>>) attributes {dimension_semantics = [#tpu.dimension_semantics<arbitrary>], iteration_bounds = array<i64: 1>, scalar_prefetch = 0 : i64, scratch_operands = 0 : i64, tpu.core_type = #tpu.core_type<tc>, window_params = [{transform_indices = @transform_0, window_bounds = array<i64: 1, 144, 784>}, {transform_indices = @transform_1, window_bounds = array<i64: 144, 2>}, {transform_indices = @transform_2, window_bounds = array<i64: 1, 144, 784>}]} {
    %c0 = arith.constant 0 : index
    %c0_0 = arith.constant 0 : index
    %c0_1 = arith.constant 0 : index
    %0 = vector.load %arg1[%c0, %c0_0, %c0_1] : memref<1x144x784xf32, #tpu.memory_space<vmem>>, vector<1x144x784xf32>
    %c0_2 = arith.constant 0 : index
    %c0_3 = arith.constant 0 : index
    %1 = vector.load %arg2[%c0_2, %c0_3] : memref<144x2xf32, #tpu.memory_space<vmem>>, vector<144x2xf32>
    %2 = vector.extract_strided_slice %1 {offsets = [0, 0], sizes = [144, 1], strides = [1, 1]} : vector<144x2xf32> to vector<144x1xf32>
    %3 = vector.shape_cast %2 : vector<144x1xf32> to vector<1x144x1xf32>
    %4 = vector.extract_strided_slice %1 {offsets = [0, 1], sizes = [144, 1], strides = [1, 1]} : vector<144x2xf32> to vector<144x1xf32>
    %5 = vector.shape_cast %4 : vector<144x1xf32> to vector<1x144x1xf32>
    %cst = arith.constant dense<0.000000e+00> : vector<144x784xf32>
    %6 = vector.multi_reduction <add>, %0, %cst [0] : vector<1x144x784xf32> to vector<144x784xf32>
    %cst_4 = arith.constant dense<0.000000e+00> : vector<144xf32>
    %7 = vector.multi_reduction <add>, %6, %cst_4 [1] : vector<144x784xf32> to vector<144xf32>
    %8 = vector.shape_cast %7 : vector<144xf32> to vector<144x1xf32>
    %cst_5 = arith.constant 0.00127551018 : f32
    %9 = vector.broadcast %cst_5 : f32 to vector<144x1xf32>
    %10 = arith.mulf %8, %9 : vector<144x1xf32>
    %11 = vector.shape_cast %10 : vector<144x1xf32> to vector<1x144x1xf32>
    %12 = vector.broadcast %11 : vector<1x144x1xf32> to vector<1x144x784xf32>
    %13 = arith.subf %0, %12 : vector<1x144x784xf32>
    %14 = arith.mulf %13, %13 : vector<1x144x784xf32>
    %cst_6 = arith.constant dense<0.000000e+00> : vector<144x784xf32>
    %15 = vector.multi_reduction <add>, %14, %cst_6 [0] : vector<1x144x784xf32> to vector<144x784xf32>
    %cst_7 = arith.constant dense<0.000000e+00> : vector<144xf32>
    %16 = vector.multi_reduction <add>, %15, %cst_7 [1] : vector<144x784xf32> to vector<144xf32>
    %17 = vector.shape_cast %16 : vector<144xf32> to vector<144x1xf32>
    %cst_8 = arith.constant 0.00127551018 : f32
    %18 = vector.broadcast %cst_8 : f32 to vector<144x1xf32>
    %19 = arith.mulf %17, %18 : vector<144x1xf32>
    %20 = vector.shape_cast %19 : vector<144x1xf32> to vector<1x144x1xf32>
    %cst_9 = arith.constant 1.000000e-03 : f32
    %21 = vector.broadcast %cst_9 : f32 to vector<1x144x1xf32>
    %22 = arith.addf %20, %21 : vector<1x144x1xf32>
    %23 = math.rsqrt %22 : vector<1x144x1xf32>
    %24 = arith.mulf %23, %3 : vector<1x144x1xf32>
    %25 = vector.broadcast %24 : vector<1x144x1xf32> to vector<1x144x784xf32>
    %26 = arith.mulf %13, %25 : vector<1x144x784xf32>
    %27 = vector.broadcast %5 : vector<1x144x1xf32> to vector<1x144x784xf32>
    %28 = arith.addf %26, %27 : vector<1x144x784xf32>
    %cst_10 = arith.constant 0.000000e+00 : f32
    %29 = vector.broadcast %cst_10 : f32 to vector<1x144x784xf32>
    %30 = arith.maximumf %28, %29 : vector<1x144x784xf32>
    %c0_11 = arith.constant 0 : index
    %c0_12 = arith.constant 0 : index
    %c0_13 = arith.constant 0 : index
    %31 = vector.load %arg3[%c0_11, %c0_12, %c0_13] : memref<1x144x784xf32, #tpu.memory_space<vmem>>, vector<1x144x784xf32>
    tpu.vector_store %arg3[%c0_11, %c0_12, %c0_13], %30 {strides = array<i32>} : memref<1x144x784xf32, #tpu.memory_space<vmem>>, vector<1x144x784xf32>,
    return
  }
  func.func @transform_0(%arg0: i32) -> (i32, i32, i32) {
    %c0_i32 = arith.constant 0 : i32
    %c0_i32_0 = arith.constant 0 : i32
    %c0_i32_1 = arith.constant 0 : i32
    return %c0_i32, %arg0, %c0_i32_0 : i32, i32, i32
  }
  func.func @transform_1(%arg0: i32) -> (i32, i32) {
    %c0_i32 = arith.constant 0 : i32
    %c0_i32_0 = arith.constant 0 : i32
    return %arg0, %c0_i32 : i32, i32
  }
  func.func @transform_2(%arg0: i32) -> (i32, i32, i32) {
    %c0_i32 = arith.constant 0 : i32
    %c0_i32_0 = arith.constant 0 : i32
    %c0_i32_1 = arith.constant 0 : i32
    return %c0_i32, %arg0, %c0_i32_0 : i32, i32, i32
  }
}

</mosaic_0001>

<bundles_post_ra>
// kernel: tpu_custom_call.1
= control target key start
LH: loop header
LB: loop body
LE: loop exit
PB: predicated region body
PF: predicated region fallthrough
CT: control target
= control target key end

     0   :  { %7 = vsyncpa [#allocation3], 0  ;;  %s3825_s0 = inlined_call_operand.hbm [shape: f32[1,144,784], index: 0, kind: input, shape index: {}]   ;;  %s3826_s1 = inlined_call_operand.vmem [shape: f32[144,2], index: 1, kind: input, shape index: {}]   ;;  %s3827_s2 = inlined_call_operand.hbm [shape: f32[1,144,784], index: 2, kind: output, shape index: {}]  }
   0x1   :  { %8 = vsyncpa [#allocation4], 0  ;;  %s13_s11 = sshll.u32 %s3825_s0, 4  ;;  %s2074_s12 = smov [#allocation2]   ;;  %s14_s11 = int_to_ptr.hbm [resolvable:$true] %s13_s11 }
   0x2   :  { %s15_s13 = sshll.u32 %s2074_s12, 4  ;;  %s2075_s14 = smov 896   ;;  %s16_s13 = int_to_ptr.vmem [resolvable:$true] %s15_s13 }
   0x3   :  { %s2076_s15 = smov 56  }
   0x4   :  { %21 = dma.hbm_to_vmem [thread:$0]  %s14_s11, 16128, %s16_s13, [#allocation3], %s2075_s14, %s2075_s14, %s2076_s15  }
   0x5   :  { %2070 = dma.done.wait [#allocation3], 16128  }
   0x6   :  { %2071 = vsyncadd [#allocation3], 4294951168  ;;  %v2101_v0 = vld [vmem:[#allocation2 + $0xe0] sm:$0xff]  ;;  %v2103_v1 = vld [vmem:[#allocation2 + $0xe8] sm:$0xff]  ;;  %vm303_vm0 = vcmask 130048   ;;  %s1943_s30 = sshll.u32 %s3827_s2, 4  ;;  %s1944_s30 = int_to_ptr.hbm [resolvable:$true] %s1943_s30 }
   0x7   :  { %v2105_v2 = vld [vmem:[#allocation2 + $0xf0] sm:$0xff]  ;;  %v335_v3 = vadd.f32 %v2103_v1, %v2101_v0  ;;  %v2109_v4 = vld [vmem:[#allocation2 + $0xf8] sm:$0xff]  ;;  %v2115_v7 = vld [vmem:[#allocation2 + $0x100] sm:$0xff] }
   0x8   :  { %v2111_v5 = vld [vmem:[#allocation2 + $0x70] sm:$0xff]  ;;  %v2113_v6 = vld [vmem:[#allocation2 + $0x78] sm:$0xff]  ;;  %4010 = vst [vmem:[#allocation8_spill] sm:$0xff] %v2115_v7  ;;  %v2118_v9 = vld [vmem:[#allocation2 + $0x80] sm:$0xff] }
   0x9   :  { %v336_v8 = vadd.f32 %v335_v3, %v2105_v2  ;;  %v317_v10 = vadd.f32 %v2113_v6, %v2111_v5  ;;  %v2122_v11 = vld [vmem:[#allocation2 + $0x108] sm:$0xff]  ;;  %v2126_v13 = vld [vmem:[#allocation2] sm:$0xff]  ;;  %v2128_v14 = vld [vmem:[#allocation2 + $0x110] sm:$0xff] }
   0xa   :  { %4011 = vst [vmem:[#allocation9_spill] sm:$0xff] %v2122_v11  ;;  %v2124_v12 = vld [vmem:[#allocation2 + $0x88] sm:$0xff]  ;;  %v2134_v18 = vld [vmem:[#allocation2 + $0x10] sm:$0xff]  ;;  %v2138_v20 = vld [vmem:[#allocation2 + $0xa0] sm:$0xff]  ;;  %v340_v28 = vsel %vm303_vm0, %v2128_v14, 0.0 }
   0xb   :  { %4012 = vst [vmem:[#allocation10_spill] sm:$0xff] %v2128_v14  ;;  %v337_v15 = vadd.f32 %v336_v8, %v2109_v4  ;;  %v318_v16 = vadd.f32 %v317_v10, %v2118_v9  ;;  %v2132_v17 = vld [vmem:[#allocation2 + $0x8] sm:$0xff]  ;;  %v2136_v19 = vld [vmem:[#allocation2 + $0x90] sm:$0xff]  ;;  %v2140_v21 = vld [vmem:[#allocation2 + $0x18] sm:$0xff]  ;;  %v322_v39 = vsel %vm303_vm0, %v2138_v20, 0.0 }
   0xc   :  { %v298_v22 = vadd.f32 %v2132_v17, %v2126_v13  ;;  %v2146_v25 = vld [vmem:[#allocation2 + $0x118] sm:$0xff]  ;;  %v2148_v26 = vld [vmem:[#allocation2 + $0x120] sm:$0xff]  ;;  %v2150_v27 = vld [vmem:[#allocation2 + $0x128] sm:$0xff] }
   0xd   :  { %v338_v23 = vadd.f32 %v337_v15, %v2115_v7  ;;  %v319_v24 = vadd.f32 %v318_v16, %v2124_v12  ;;  %v2154_v29 = vld [vmem:[#allocation2 + $0x98] sm:$0xff]  ;;  %v2156_v30 = vld [vmem:[#allocation2 + $0x20] sm:$0xff]  ;;  %v344_v32 = vadd.f32 %v2148_v26, %v2146_v25  ;;  %v2163_v35 = vld [vmem:[#allocation2 + $0x28] sm:$0xff] }
   0xe   :  { %v299_v31 = vadd.f32 %v298_v22, %v2134_v18  ;;  %v2165_v36 = vld [vmem:[#allocation2 + $0x130] sm:$0xff]  ;;  %v2167_v37 = vld [vmem:[#allocation2 + $0xa8] sm:$0xff]  ;;  %v2176_v42 = vld [vmem:[#allocation2 + $0x138] sm:$0xff] }
   0xf   :  { %v339_v33 = vadd.f32 %v338_v23, %v2122_v11  ;;  %v320_v34 = vadd.f32 %v319_v24, %v2136_v19  ;;  %v2169_v38 = vld [vmem:[#allocation2 + $0xb0] sm:$0xff]  ;;  %v345_v43 = vadd.f32 %v344_v32, %v2150_v27  ;;  %v2179_v44 = vld [vmem:[#allocation2 + $0xb8] sm:$0xff]  ;;  %v2184_v48 = vld [vmem:[#allocation2 + $0x140] sm:$0xff] }
  0x10   :  { %v2173_v40 = vld [vmem:[#allocation2 + $0x30] sm:$0xff]  ;;  %v300_v41 = vadd.f32 %v299_v31, %v2140_v21  ;;  %v326_v45 = vadd.f32 %v2169_v38, %v2167_v37  ;;  %v2186_v49 = vld [vmem:[#allocation2 + $0xc0] sm:$0xff]  ;;  %v2188_v50 = vld [vmem:[#allocation2 + $0x38] sm:$0xff] }
  0x11   :  { %v341_v46 = vadd.f32 %v340_v28, %v339_v33  ;;  %v321_v47 = vadd.f32 %v320_v34, %v2154_v29  ;;  %v2191_v52 = vld [vmem:[#allocation2 + $0x148] sm:$0xff]  ;;  %v346_v53 = vadd.f32 %v345_v43, %v2165_v36  ;;  %v2195_v55 = vld [vmem:[#allocation2 + $0x40] sm:$0xff]  ;;  %v304_v58 = vsel %vm303_vm0, %v2173_v40, 0.0  ;;  %v2203_v60 = vld [vmem:[#allocation2 + $0xd8] sm:$0xff] }
  0x12   :  { %v301_v51 = vadd.f32 %v300_v41, %v2156_v30  ;;  %v327_v54 = vadd.f32 %v326_v45, %v2179_v44  ;;  %v2197_v56 = vld [vmem:[#allocation2 + $0x48] sm:$0xff]  ;;  %v2205_v61 = vld [vmem:[#allocation2 + $0x50] sm:$0xff]  ;;  %v308_v62 = vadd.f32 %v2195_v55, %v2188_v50  ;;  %v2212_v10 = vld [vmem:[#allocation2 + $0x1c0] sm:$0xff]  ;;  %v349_v22 = vsel %vm303_vm0, %v2191_v52, 0.0 }
  0x13   :  { %342 = vadd.xlane.f32.xlu2 %v341_v46  ;;  %v323_v57 = vadd.f32 %v322_v39, %v321_v47  ;;  %v2201_v59 = vld [vmem:[#allocation2 + $0xc8] sm:$0xff]  ;;  %v347_v3 = vadd.f32 %v346_v53, %v2176_v42  ;;  %4013 = vst [vmem:[#allocation11_spill] sm:$0xff] %v2212_v10  ;;  %v2216_v16 = vld [vmem:[#allocation2 + $0x1d0] sm:$0xff]  ;;  %v2222_v24 = vld [vmem:[#allocation2 + $0x58] sm:$0xff]  ;;  %v331_v46 = vsel %vm303_vm0, %v2203_v60, 0.0 }
  0x14   :  { %v302_v63 = vadd.f32 %v301_v51, %v2163_v35  ;;  %v328_v8 = vadd.f32 %v327_v54, %v2186_v49  ;;  %v2214_v15 = vld [vmem:[#allocation2 + $0x1c8] sm:$0xff]  ;;  %4015 = vst [vmem:[#allocation13_spill] sm:$0xff] %v2216_v16  ;;  %v2220_v23 = vld [vmem:[#allocation2 + $0xd0] sm:$0xff]  ;;  %v309_v28 = vadd.f32 %v308_v62, %v2197_v56  ;;  %v2229_v39 = vld [vmem:[#allocation2 + $0x60] sm:$0xff] }
  0x15   :  { %4014 = vst [vmem:[#allocation12_spill] sm:$0xff] %v2214_v15  ;;  %324 = vadd.xlane.f32.xlu1 %v323_v57  ;;  %v371_v31 = vadd.f32 %v2214_v15, %v2212_v10  ;;  %v348_v33 = vadd.f32 %v347_v3, %v2184_v48  ;;  %v2231_v41 = vld [vmem:[#allocation2 + $0x1d8] sm:$0xff]  ;;  %v2233_v43 = vld [vmem:[#allocation2 + $0x188] sm:$0xff]  ;;  %v2235_v45 = vld [vmem:[#allocation2 + $0x190] sm:$0xff] }
  0x16   :  { %4016 = vst [vmem:[#allocation14_spill] sm:$0xff] %v2222_v24  ;;  %v305_v32 = vadd.f32 %v304_v58, %v302_v63  ;;  %v329_v34 = vadd.f32 %v328_v8, %v2201_v59  ;;  %v2239_v47 = vld [vmem:[#allocation2 + $0x68] sm:$0xff]  ;;  %v310_v51 = vadd.f32 %v309_v28, %v2205_v61  ;;  %v2242_v53 = vld [vmem:[#allocation2 + $0x1e0] sm:$0xff]  ;;  %v2245_v57 = vld [vmem:[#allocation2 + $0x198] sm:$0xff]  ;;  %v362_v58 = vadd.f32 %v2235_v45, %v2233_v43 }
  0x17   :  { %4017 = vst [vmem:[#allocation15_spill] sm:$0xff] %v2229_v39  ;;  %v372_v54 = vadd.f32 %v371_v31, %v2216_v16  ;;  %v350_v62 = vadd.f32 %v349_v22, %v348_v33  ;;  %v2250_v3 = vld [vmem:[#allocation2 + $0x1e8] sm:$0xff]  ;;  %v2252_v8 = vld [vmem:[#allocation2 + $0x1a0] sm:$0xff]  ;;  %v2254_v11 = vld [vmem:[#allocation2 + $0x150] sm:$0xff]  ;;  %v313_v33 = vsel %vm303_vm0, %v2239_v47, 0.0 }
  0x18   :  { %4018 = vst [vmem:[#allocation16_spill] sm:$0xff] %v2231_v41  ;;  %306 = vadd.xlane.f32.xlu0 %v305_v32  ;;  %v330_v63 = vadd.f32 %v329_v34, %v2220_v23  ;;  %v311_v28 = vadd.f32 %v310_v51, %v2222_v24  ;;  %v2257_v14 = vld [vmem:[#allocation2 + $0x1f0] sm:$0xff]  ;;  %v363_v7 = vadd.f32 %v362_v58, %v2245_v57  ;;  %v2261_v16 = vld [vmem:[#allocation2 + $0x158] sm:$0xff]  ;;  %v2263_v32 = vld [vmem:[#allocation2 + $0x160] sm:$0xff] }
  0x19   :  { %4019 = vst [vmem:[#allocation17_spill] sm:$0xff] %v2233_v43  ;;  %v373_v31 = vadd.f32 %v372_v54, %v2231_v41  ;;  %v2267_v34 = vld [vmem:[#allocation2 + $0x1a8] sm:$0xff]  ;;  %v353_v51 = vadd.f32 %v2261_v16, %v2254_v11  ;;  %v2282_v41 = vld [vmem:[#allocation2 + $0x278] sm:$0xff]  ;;  %v376_v15 = vsel %vm303_vm0, %v2257_v14, 0.0  ;;  %v2286_v10 = vld [vmem:[#allocation2 + $0x1b0] sm:$0xff] }
  0x1a   :  { %4020 = vst [vmem:[#allocation18_spill] sm:$0xff] %v2235_v45  ;;  %v332_v22 = vadd.f32 %v331_v46, %v330_v63  ;;  %v2269_v45 = vld [vmem:[#allocation2 + $0x1b8] sm:$0xff]  ;;  %v2271_v43 = vld [vmem:[#allocation2 + $0x168] sm:$0xff]  ;;  %v312_v54 = vadd.f32 %v311_v28, %v2229_v39  ;;  %v2280_v63 = vld [vmem:[#allocation2 + $0x270] sm:$0xff] }
  0x1b   :  { %4021 = vst [vmem:[#allocation19_spill] sm:$0xff] %v2239_v47  ;;  %351 = vadd.xlane.f32.xlu2 %v350_v62  ;;  %v374_v58 = vadd.f32 %v373_v31, %v2242_v53  ;;  %v2278_v46 = vld [vmem:[#allocation2 + $0x268] sm:$0xff]  ;;  %v2288_v47 = vld [vmem:[#allocation2 + $0x170] sm:$0xff]  ;;  %v354_v62 = vadd.f32 %v353_v51, %v2263_v32  ;;  %v367_v39 = vsel %vm303_vm0, %v2269_v45, 0.0  ;;  %v2305_v51 = vld [vmem:[#allocation2 + $0x180] sm:$0xff] }
  0x1c   :  { %4022 = vst [vmem:[#allocation20_spill] sm:$0xff] %v2242_v53  ;;  %v398_v28 = vadd.f32 %v2280_v63, %v2278_v46  ;;  %v2295_v53 = vld [vmem:[#allocation2 + $0x280] sm:$0xff] }
  0x1d   :  { %4023 = vst [vmem:[#allocation21_spill] sm:$0xff] %v2245_v57  ;;  %v364_v57 = vadd.f32 %v363_v7, %v2252_v8  ;;  %333 = vadd.xlane.f32.xlu1 %v332_v22  ;;  %v314_v7 = vadd.f32 %v313_v33, %v312_v54  ;;  %v375_v31 = vadd.f32 %v374_v58, %v2250_v3  ;;  %v2309_v54 = vld [vmem:[#allocation2 + $0x240] sm:$0xff] }
  0x1e   :  { %4024 = vst [vmem:[#allocation22_spill] sm:$0xff] %v2250_v3  ;;  %v355_v22 = vadd.f32 %v354_v62, %v2271_v43  ;;  %v399_v33 = vadd.f32 %v398_v28, %v2282_v41  ;;  %v2321_v62 = vld [vmem:[#allocation2 + $0x290] sm:$0xff]  ;;  %v2421_v24 = vld [vmem:[#allocation2 + $0x2c0] sm:$0xff] }
  0x1f   :  { %4025 = vst [vmem:[#allocation23_spill] sm:$0xff] %v2252_v8  ;;  %v365_v8 = vadd.f32 %v364_v57, %v2267_v34  ;;  %v377_v58 = vadd.f32 %v376_v15, %v375_v31  ;;  %v2327_v15 = vld [vmem:[#allocation2 + $0x208] sm:$0xff]  ;;  %v358_v31 = vsel %vm303_vm0, %v2305_v51, 0.0 }
  0x20   :  { %4026 = vst [vmem:[#allocation24_spill] sm:$0xff] %v2254_v11  ;;  %v2303_v11 = vld [vmem:[#allocation2 + $0x178] sm:$0xff]  ;;  %315 = vadd.xlane.f32.xlu0 %v314_v7  ;;  %v356_v3 = vadd.f32 %v355_v22, %v2288_v47  ;;  %v400_v28 = vadd.f32 %v399_v33, %v2295_v53  ;;  %v2335_v7 = vld [vmem:[#allocation2 + $0x210] sm:$0xff] }
  0x21   :  { %4027 = vst [vmem:[#allocation25_spill] sm:$0xff] %v2257_v14  ;;  %v2299_v14 = vld [vmem:[#allocation2 + $0x238] sm:$0xff] }
  0x22   :  { %4028 = vst [vmem:[#allocation26_spill] sm:$0xff] %v2261_v16  ;;  %v2297_v16 = vld [vmem:[#allocation2 + $0x230] sm:$0xff]  ;;  %v357_v33 = vadd.f32 %v356_v3, %v2303_v11  ;;  %v2354_v3 = vld [vmem:[#allocation2 + $0x218] sm:$0xff] }
  0x23   :  { %4029 = vst [vmem:[#allocation27_spill] sm:$0xff] %v2263_v32  ;;  %v389_v57 = vadd.f32 %v2299_v14, %v2297_v16  ;;  %378 = vadd.xlane.f32.xlu2 %v377_v58  ;;  %v2368_v32 = vld [vmem:[#allocation2 + $0x2e0] sm:$0xff] }
  0x24   :  { %4030 = vst [vmem:[#allocation28_spill] sm:$0xff] %v2267_v34  ;;  %v366_v34 = vadd.f32 %v365_v8, %v2286_v10 }
  0x25   :  { %4031 = vst [vmem:[#allocation29_spill] sm:$0xff] %v2269_v45  ;;  %v2318_v45 = vld [vmem:[#allocation2 + $0x1f8] sm:$0xff] }
  0x26   :  { %4032 = vst [vmem:[#allocation30_spill] sm:$0xff] %v2271_v43  ;;  %v2325_v43 = vld [vmem:[#allocation2 + $0x200] sm:$0xff]  ;;  %v368_v8 = vadd.f32 %v367_v39, %v366_v34  ;;  %v2344_v39 = vld [vmem:[#allocation2 + $0x318] sm:$0xff] }
  0x27   :  { %4033 = vst [vmem:[#allocation31_spill] sm:$0xff] %v2278_v46  ;;  %v2316_v46 = vld [vmem:[#allocation2 + $0x248] sm:$0xff]  ;;  %v380_v22 = vadd.f32 %v2325_v43, %v2318_v45  ;;  %v2346_v34 = vld [vmem:[#allocation2 + $0x320] sm:$0xff] }
  0x28   :  { %4034 = vst [vmem:[#allocation32_spill] sm:$0xff] %v2280_v63  ;;  %v2314_v63 = vld [vmem:[#allocation2 + $0x288] sm:$0xff]  ;;  %369 = vadd.xlane.f32.xlu1 %v368_v8  ;;  %v2385_v8 = vld [vmem:[#allocation2 + $0x2f0] sm:$0xff] }
  0x29   :  { %4035 = vst [vmem:[#allocation33_spill] sm:$0xff] %v2282_v41  ;;  %v390_v41 = vadd.f32 %v389_v57, %v2309_v54  ;;  %v401_v57 = vadd.f32 %v400_v28, %v2314_v63 }
  0x2a   :  { %4036 = vst [vmem:[#allocation34_spill] sm:$0xff] %v2286_v10  ;;  %v2342_v10 = vld [vmem:[#allocation2 + $0x310] sm:$0xff] }
  0x2b   :  { %4037 = vst [vmem:[#allocation35_spill] sm:$0xff] %v2288_v47  ;;  %v425_v28 = vadd.f32 %v2344_v39, %v2342_v10  ;;  %v2366_v47 = vld [vmem:[#allocation2 + $0x2d8] sm:$0xff] }
  0x2c   :  { %4038 = vst [vmem:[#allocation36_spill] sm:$0xff] %v2295_v53  ;;  %v3866_v53 = vmov 1  }
  0x2d   :  { %4039 = vst [vmem:[#allocation37_spill] sm:$0xff] %v2297_v16  ;;  %v2333_v16 = vld [vmem:[#allocation2 + $0x250] sm:$0xff]  ;;  %1963 = vset.pattern.permute.xlu0 %v3866_v53  ;;  %1964 = vset.pattern.permute.xlu2 %v3866_v53 }
  0x2e   :  { %4040 = vst [vmem:[#allocation38_spill] sm:$0xff] %v2299_v14  ;;  %v2331_v14 = vld [vmem:[#allocation2 + $0x298] sm:$0xff]  ;;  %1962 = vset.pattern.permute.xlu1 %v3866_v53 }
  0x2f   :  { %4041 = vst [vmem:[#allocation39_spill] sm:$0xff] %v2303_v11  ;;  %v2364_v11 = vld [vmem:[#allocation2 + $0x328] sm:$0xff] }
  0x30   :  { %4042 = vst [vmem:[#allocation40_spill] sm:$0xff] %v2305_v51  ;;  %v2350_v51 = vld [vmem:[#allocation2 + $0x258] sm:$0xff] }
  0x31   :  { %4043 = vst [vmem:[#allocation41_spill] sm:$0xff] %v2309_v54  ;;  %v391_v54 = vadd.f32 %v390_v41, %v2316_v46  ;;  %v381_v41 = vadd.f32 %v380_v22, %v2327_v15  ;;  %v2370_v22 = vld [vmem:[#allocation2 + $0x220] sm:$0xff] }
  0x32   :  { %4044 = vst [vmem:[#allocation42_spill] sm:$0xff] %v2314_v63  ;;  %v402_v63 = vadd.f32 %v401_v57, %v2321_v62  ;;  %v2376_v57 = vld [vmem:[#allocation2 + $0x2e8] sm:$0xff] }
  0x33   :  { %4045 = vst [vmem:[#allocation43_spill] sm:$0xff] %v2316_v46  ;;  %v359_v46 = vadd.f32 %v358_v31, %v357_v33  ;;  %v392_v58 = vadd.f32 %v391_v54, %v2333_v16  ;;  %v382_v31 = vadd.f32 %v381_v41, %v2335_v7  ;;  %v426_v33 = vadd.f32 %v425_v28, %v2346_v34  ;;  %v2390_v28 = vld [vmem:[#allocation2 + $0x338] sm:$0xff] }
  0x34   :  { %4046 = vst [vmem:[#allocation44_spill] sm:$0xff] %v2318_v45  ;;  %v403_v45 = vsel %vm303_vm0, %v2331_v14, 0.0  ;;  %v416_v54 = vadd.f32 %v2368_v32, %v2366_v47 }
  0x35   :  { %4047 = vst [vmem:[#allocation45_spill] sm:$0xff] %v2321_v62  ;;  %v393_v53 = vadd.f32 %v392_v58, %v2350_v51  ;;  %v404_v62 = vadd.f32 %v403_v45, %v402_v63  ;;  %v383_v41 = vadd.f32 %v382_v31, %v2354_v3  ;;  %v2396_v58 = vld [vmem:[#allocation2 + $0x2b0] sm:$0xff]  ;;  %360 = vadd.xlane.f32.xlu0 %v359_v46  ;;  %v2404_v45 = vld [vmem:[#allocation2 + $0x2b8] sm:$0xff] }
  0x36   :  { %4048 = vst [vmem:[#allocation46_spill] sm:$0xff] %v2325_v43  ;;  %v2352_v43 = vld [vmem:[#allocation2 + $0x260] sm:$0xff]  ;;  %v2411_v46 = vld [vmem:[#allocation2 + $0x3b8] sm:$0xff] }
  0x37   :  { %4049 = vst [vmem:[#allocation47_spill] sm:$0xff] %v2327_v15  ;;  %v2419_v15 = vld [vmem:[#allocation2 + $0x308] sm:$0xff]  ;;  %405 = vadd.xlane.f32.xlu2 %v404_v62 }
  0x38   :  { %4050 = vst [vmem:[#allocation48_spill] sm:$0xff] %v2331_v14  ;;  %v2387_v14 = vld [vmem:[#allocation2 + $0x2a0] sm:$0xff] }
  0x39   :  { %4051 = vst [vmem:[#allocation49_spill] sm:$0xff] %v2333_v16  ;;  %v394_v16 = vsel %vm303_vm0, %v2352_v43, 0.0 }
  0x3a   :  { %4052 = vst [vmem:[#allocation50_spill] sm:$0xff] %v2335_v7  ;;  %v2402_v7 = vld [vmem:[#allocation2 + $0x2f8] sm:$0xff]  ;;  %v395_v31 = vadd.f32 %v394_v16, %v393_v53 }
  0x3b   :  { %4053 = vst [vmem:[#allocation51_spill] sm:$0xff] %v2342_v10  ;;  %v2383_v10 = vld [vmem:[#allocation2 + $0x330] sm:$0xff] }
  0x3c   :  { %4054 = vst [vmem:[#allocation52_spill] sm:$0xff] %v2344_v39  ;;  %v2372_v39 = vld [vmem:[#allocation2 + $0x228] sm:$0xff]  ;;  %396 = vadd.xlane.f32.xlu1 %v395_v31  ;;  %v2458_v31 = vld [vmem:[#allocation2 + $0x350] sm:$0xff] }
  0x3d   :  { %4055 = vst [vmem:[#allocation53_spill] sm:$0xff] %v2346_v34  ;;  %v427_v34 = vadd.f32 %v426_v33, %v2364_v11  ;;  %v384_v33 = vadd.f32 %v383_v41, %v2370_v22 }
  0x3e   :  { %4056 = vst [vmem:[#allocation54_spill] sm:$0xff] %v2350_v51  ;;  %v2400_v51 = vld [vmem:[#allocation2 + $0x340] sm:$0xff] }
  0x3f   :  { %4057 = vst [vmem:[#allocation55_spill] sm:$0xff] %v2352_v43  ;;  %v385_v43 = vsel %vm303_vm0, %v2372_v39, 0.0 }
  0x40   :  { %4058 = vst [vmem:[#allocation56_spill] sm:$0xff] %v2354_v3  ;;  %v2417_v3 = vld [vmem:[#allocation2 + $0x300] sm:$0xff] }
  0x41   :  { %4059 = vst [vmem:[#allocation57_spill] sm:$0xff] %v2364_v11  ;;  %v2413_v11 = vld [vmem:[#allocation2 + $0x3c0] sm:$0xff] }
  0x42   :  { %4060 = vst [vmem:[#allocation58_spill] sm:$0xff] %v2366_v47  ;;  %v2394_v47 = vld [vmem:[#allocation2 + $0x2a8] sm:$0xff]  ;;  %v452_v53 = vadd.f32 %v2413_v11, %v2411_v46 }
  0x43   :  { %4061 = vst [vmem:[#allocation59_spill] sm:$0xff] %v2368_v32  ;;  %v417_v32 = vadd.f32 %v416_v54, %v2376_v57  ;;  %v407_v63 = vadd.f32 %v2394_v47, %v2387_v14  ;;  %v428_v54 = vadd.f32 %v427_v34, %v2383_v10  ;;  %v430_v34 = vsel %vm303_vm0, %v2400_v51, 0.0 }
  0x44   :  { %4062 = vst [vmem:[#allocation60_spill] sm:$0xff] %v2370_v22  ;;  %v2436_v22 = vld [vmem:[#allocation2 + $0x2c8] sm:$0xff] }
  0x45   :  { %4063 = vst [vmem:[#allocation61_spill] sm:$0xff] %v2372_v39  ;;  %v2415_v39 = vld [vmem:[#allocation2 + $0x3c8] sm:$0xff]  ;;  %v408_v16 = vadd.f32 %v407_v63, %v2396_v58 }
  0x46   :  { %4064 = vst [vmem:[#allocation62_spill] sm:$0xff] %v2376_v57  ;;  %v418_v57 = vadd.f32 %v417_v32, %v2385_v8  ;;  %v429_v32 = vadd.f32 %v428_v54, %v2390_v28  ;;  %v453_v62 = vadd.f32 %v452_v53, %v2415_v39 }
  0x47   :  { %4065 = vst [vmem:[#allocation63_spill] sm:$0xff] %v2383_v10  ;;  %v2432_v10 = vld [vmem:[#allocation2 + $0x380] sm:$0xff]  ;;  %v409_v63 = vadd.f32 %v408_v16, %v2404_v45 }
  0x48   :  { %4066 = vst [vmem:[#allocation64_spill] sm:$0xff] %v2385_v8  ;;  %v419_v41 = vadd.f32 %v418_v57, %v2402_v7  ;;  %v2430_v8 = vld [vmem:[#allocation2 + $0x3d0] sm:$0xff] }
  0x49   :  { %4067 = vst [vmem:[#allocation65_spill] sm:$0xff] %v2387_v14  ;;  %v386_v14 = vadd.f32 %v385_v43, %v384_v33  ;;  %v421_v43 = vsel %vm303_vm0, %v2419_v15, 0.0  ;;  %v2453_v33 = vld [vmem:[#allocation2 + $0x2d0] sm:$0xff]  ;;  %v410_v16 = vadd.f32 %v409_v63, %v2421_v24  ;;  %v454_v53 = vadd.f32 %v453_v62, %v2430_v8 }
  0x4a   :  { %4068 = vst [vmem:[#allocation66_spill] sm:$0xff] %v2390_v28  ;;  %v420_v57 = vadd.f32 %v419_v41, %v2417_v3  ;;  %v2449_v28 = vld [vmem:[#allocation2 + $0x348] sm:$0xff]  ;;  %v2460_v41 = vld [vmem:[#allocation2 + $0x358] sm:$0xff] }
  0x4b   :  { %4069 = vst [vmem:[#allocation67_spill] sm:$0xff] %v2394_v47  ;;  %v2434_v47 = vld [vmem:[#allocation2 + $0x388] sm:$0xff]  ;;  %387 = vadd.xlane.f32.xlu0 %v386_v14 }
  0x4c   :  { %4070 = vst [vmem:[#allocation68_spill] sm:$0xff] %v2400_v51  ;;  %v443_v54 = vadd.f32 %v2434_v47, %v2432_v10  ;;  %v2467_v51 = vld [vmem:[#allocation2 + $0x3e0] sm:$0xff] }
  0x4d   :  { %4071 = vst [vmem:[#allocation69_spill] sm:$0xff] %v2402_v7  ;;  %v2445_v7 = vld [vmem:[#allocation2 + $0x3d8] sm:$0xff] }
  0x4e   :  { %4072 = vst [vmem:[#allocation70_spill] sm:$0xff] %v2411_v46  ;;  %v2447_v46 = vld [vmem:[#allocation2 + $0x398] sm:$0xff]  ;;  %v455_v63 = vadd.f32 %v454_v53, %v2445_v7 }
  0x4f   :  { %4073 = vst [vmem:[#allocation71_spill] sm:$0xff] %v2413_v11  ;;  %v2440_v11 = vld [vmem:[#allocation2 + $0x390] sm:$0xff] }
  0x50   :  { %4074 = vst [vmem:[#allocation72_spill] sm:$0xff] %v2415_v39  ;;  %v434_v39 = vadd.f32 %v2458_v31, %v2449_v28  ;;  %v456_v53 = vadd.f32 %v455_v63, %v2467_v51 }
  0x51   :  { %4075 = vst [vmem:[#allocation73_spill] sm:$0xff] %v2417_v3  ;;  %v2462_v3 = vld [vmem:[#allocation2 + $0x3a0] sm:$0xff] }
  0x52   :  { %4076 = vst [vmem:[#allocation74_spill] sm:$0xff] %v2419_v15  ;;  %v411_v15 = vadd.f32 %v410_v16, %v2436_v22  ;;  %v2481_v16 = vld [vmem:[#allocation2 + $0x368] sm:$0xff] }
  0x53   :  { %4077 = vst [vmem:[#allocation75_spill] sm:$0xff] %v2430_v8  ;;  %v435_v8 = vadd.f32 %v434_v39, %v2460_v41 }
  0x54   :  { %4078 = vst [vmem:[#allocation76_spill] sm:$0xff] %v2432_v10  ;;  %v431_v10 = vadd.f32 %v430_v34, %v429_v32  ;;  %v412_v32 = vsel %vm303_vm0, %v2453_v33, 0.0  ;;  %v2475_v34 = vld [vmem:[#allocation2 + $0x3e8] sm:$0xff] }
  0x55   :  { %4079 = vst [vmem:[#allocation77_spill] sm:$0xff] %v2434_v47  ;;  %v444_v47 = vadd.f32 %v443_v54, %v2440_v11  ;;  %v2471_v54 = vld [vmem:[#allocation2 + $0x360] sm:$0xff] }
  0x56   :  { %4080 = vst [vmem:[#allocation78_spill] sm:$0xff] %v2440_v11  ;;  %v422_v11 = vadd.f32 %v421_v43, %v420_v57  ;;  %432 = vadd.xlane.f32.xlu2 %v431_v10  ;;  %v436_v57 = vadd.f32 %v435_v8, %v2471_v54  ;;  %v413_v43 = vadd.f32 %v412_v32, %v411_v15 }
  0x57   :  { %4081 = vst [vmem:[#allocation79_spill] sm:$0xff] %v2445_v7  ;;  %v445_v62 = vadd.f32 %v444_v47, %v2447_v46  ;;  %v2484_v47 = vld [vmem:[#allocation2 + $0x3b0] sm:$0xff] }
  0x58   :  { %4082 = vst [vmem:[#allocation80_spill] sm:$0xff] %v2447_v46  ;;  %v457_v46 = vsel %vm303_vm0, %v2475_v34, 0.0  ;;  %423 = vadd.xlane.f32.xlu1 %v422_v11  ;;  %v2490_v7 = vld [vmem:[#allocation2 + $0x370] sm:$0xff]  ;;  %v448_v10 = vsel %vm303_vm0, %v2484_v47, 0.0  ;;  %414 = vadd.xlane.f32.xlu0 %v413_v43 }
  0x59   :  { %4083 = vst [vmem:[#allocation81_spill] sm:$0xff] %v2458_v31  ;;  %v2478_v31 = vld [vmem:[#allocation2 + $0x3a8] sm:$0xff]  ;;  %v446_v14 = vadd.f32 %v445_v62, %v2462_v3  ;;  %v437_v62 = vadd.f32 %v436_v57, %v2481_v16  ;;  %v458_v63 = vadd.f32 %v457_v46, %v456_v53  ;;  %v154_v46 = vld [vmem:[%s3826_s1] sm:$0xff]  ;;  %v160_v43 = vld [vmem:[%s3826_s1 + $0x30] sm:$0xff] }
  0x5a   :  { %4084 = vst [vmem:[#allocation82_spill] sm:$0xff] %v2462_v3  ;;  %v2495_v3 = vld [vmem:[#allocation2 + $0x378] sm:$0xff]  ;;  %v155_v57 = vld [vmem:[%s3826_s1 + $0x8] sm:$0xff]  ;;  %v158_v53 = vld [vmem:[%s3826_s1 + $0x20] sm:$0xff] }
  0x5b   :  { %4085 = vst [vmem:[#allocation83_spill] sm:$0xff] %v2484_v47  ;;  %v447_v39 = vadd.f32 %v446_v14, %v2478_v31  ;;  %v438_v8 = vadd.f32 %v437_v62, %v2490_v7  ;;  %v439_v32 = vsel %vm303_vm0, %v2495_v3, 0.0  ;;  %v156_v14 = vld [vmem:[%s3826_s1 + $0x10] sm:$0xff]  ;;  %v161_v62 = vld [vmem:[%s3826_s1 + $0x38] sm:$0xff] }
  0x5d   :  { %v449_v15 = vadd.f32 %v448_v10, %v447_v39  ;;  %v440_v11 = vadd.f32 %v439_v32, %v438_v8  ;;  %v157_v39 = vld [vmem:[%s3826_s1 + $0x18] sm:$0xff]  ;;  %v163_v10 = vld [vmem:[%s3826_s1 + $0x48] sm:$0xff]  ;;  %v164_v8 = vld [vmem:[%s3826_s1 + $0x50] sm:$0xff] }
  0x5e   :  { %459 = vadd.xlane.f32.xlu2 %v458_v63  ;;  %v159_v63 = vld [vmem:[%s3826_s1 + $0x28] sm:$0xff]  ;;  %v162_v32 = vld [vmem:[%s3826_s1 + $0x40] sm:$0xff] }
  0x60   :  { %450 = vadd.xlane.f32.xlu1 %v449_v15  ;;  %441 = vadd.xlane.f32.xlu0 %v440_v11  ;;  %v166_v15 = vld [vmem:[%s3826_s1 + $0x60] sm:$0xff]  ;;  %v167_v11 = vld [vmem:[%s3826_s1 + $0x68] sm:$0xff] }
  0x74   :  { %1476 = vperm.xlu0 %1963, %v155_v57   ;;  %v168_v57 = vld [vmem:[%s3826_s1 + $0x70] sm:$0xff] }
  0x76   :  { %1481 = vperm.xlu2 %1964, %v156_v14   ;;  %v165_v14 = vld [vmem:[%s3826_s1 + $0x58] sm:$0xff] }
  0x79   :  { %1471 = vperm.xlu1 %1962, %v154_v46  }
  0x7c   :  { %1501 = vperm.xlu0 %1963, %v160_v43  }
  0x7e   :  { %1491 = vperm.xlu2 %1964, %v158_v53  }
  0x81   :  { %1486 = vperm.xlu1 %1962, %v157_v39  }
  0x84   :  { %1516 = vperm.xlu0 %1963, %v163_v10  }
  0x86   :  { %1506 = vperm.xlu2 %1964, %v161_v62   ;;  %v343_v46 = vpop.xlane.xlu2 %342 }
  0x87   :  { %v2545_v53 = vmul.f32 0.0012755102, %v343_v46 }
  0x88   :  { %v325_v43 = vpop.xlane.xlu1 %324 }
  0x89   :  { %1496 = vperm.xlu1 %1962, %v159_v63   ;;  %v463_v39 = vmul.f32 0.0012755102, %v325_v43 }
  0x8b   :  { %v307_v62 = vpop.xlane.xlu0 %306  ;;  %v2548_v10 = vsub.f32 %v2111_v5, %v463_v39  ;;  %v2551_v63 = vsub.f32 %v2113_v6, %v463_v39  ;;  %v2567_v5 = vsub.f32 %v2109_v4, %v2545_v53  ;;  %v2570_v6 = vsub.f32 %v2118_v9, %v463_v39 }
  0x8c   :  { %1531 = vperm.xlu0 %1963, %v166_v15   ;;  %v461_v15 = vmul.f32 0.0012755102, %v307_v62 }
  0x8d   :  { %4086 = vst [vmem:[#allocation84_spill] sm:$0xff] %v2548_v10 }
  0x8e   :  { %1521 = vperm.xlu2 %1964, %v164_v8   ;;  %4087 = vst [vmem:[#allocation85_spill] sm:$0xff] %v2551_v63  ;;  %v2555_v8 = vsub.f32 %v2101_v0, %v2545_v53  ;;  %v2576_v0 = vsub.f32 %v2136_v19, %v463_v39  ;;  %v2585_v46 = vsub.f32 %v2132_v17, %v461_v15 }
  0x8f   :  { %4091 = vst [vmem:[#allocation89_spill] sm:$0xff] %v2567_v5  ;;  %v2588_v4 = vsub.f32 %v2134_v18, %v461_v15  ;;  %v2591_v9 = vsub.f32 %v2140_v21, %v461_v15  ;;  %v2597_v19 = vsub.f32 %v2173_v40, %v461_v15  ;;  %v2604_v43 = vsub.f32 %v2163_v35, %v461_v15 }
  0x90   :  { %4088 = vst [vmem:[#allocation86_spill] sm:$0xff] %v2555_v8  ;;  %v334_v17 = vpop.xlane.xlu1 %333  ;;  %v606_v21 = vmul.f32 %v2585_v46, %v2585_v46  ;;  %v621_v35 = vmul.f32 %v2570_v6, %v2570_v6 }
  0x91   :  { %1511 = vperm.xlu1 %1962, %v162_v32   ;;  %v2559_v32 = vsub.f32 %v2103_v1, %v2545_v53  ;;  %v2579_v1 = vsub.f32 %v2138_v20, %v463_v39  ;;  %4094 = vst [vmem:[#allocation92_spill] sm:$0xff] %v2585_v46  ;;  %v619_v20 = vmul.f32 %v2548_v10, %v2548_v10  ;;  %v464_v40 = vmul.f32 0.0012755102, %v334_v17 }
  0x92   :  { %4095 = vst [vmem:[#allocation93_spill] sm:$0xff] %v2588_v4  ;;  %v611_v62 = vmul.f32 %v2597_v19, %v2597_v19  ;;  %v2615_v10 = vsub.f32 %v2154_v29, %v463_v39 }
  0x93   :  { %4089 = vst [vmem:[#allocation87_spill] sm:$0xff] %v2559_v32  ;;  %v316_v47 = vpop.xlane.xlu0 %315  ;;  %v625_v17 = vmul.f32 %v2579_v1, %v2579_v1  ;;  %v2629_v29 = vsub.f32 %v2169_v38, %v464_v40 }
  0x94   :  { %4092 = vst [vmem:[#allocation90_spill] sm:$0xff] %v2579_v1 }
  0x95   :  { %4096 = vst [vmem:[#allocation94_spill] sm:$0xff] %v2591_v9 }
  0x96   :  { %1536 = vperm.xlu2 %1964, %v167_v11   ;;  %v2563_v11 = vsub.f32 %v2105_v2, %v2545_v53  ;;  %v2582_v2 = vsub.f32 %v2126_v13, %v461_v15  ;;  %4098 = vst [vmem:[#allocation96_spill] sm:$0xff] %v2597_v19  ;;  %v620_v13 = vmul.f32 %v2551_v63, %v2551_v63 }
  0x97   :  { %4099 = vst [vmem:[#allocation97_spill] sm:$0xff] %v2604_v43  ;;  %v2626_v19 = vsub.f32 %v2167_v37, %v464_v40 }
  0x98   :  { %4090 = vst [vmem:[#allocation88_spill] sm:$0xff] %v2563_v11  ;;  %v605_v18 = vmul.f32 %v2582_v2, %v2582_v2 }
  0x99   :  { %1526 = vperm.xlu1 %1962, %v165_v14   ;;  %v2573_v14 = vsub.f32 %v2124_v12, %v463_v39  ;;  %4093 = vst [vmem:[#allocation91_spill] sm:$0xff] %v2582_v2  ;;  %v2594_v12 = vsub.f32 %v2156_v30, %v461_v15  ;;  %v607_v30 = vmul.f32 %v2588_v4, %v2588_v4 }
  0x9a   :  { %4100 = vst [vmem:[#allocation98_spill] sm:$0xff] %v2615_v10  ;;  %v608_v2 = vmul.f32 %v2591_v9, %v2591_v9  ;;  %v857_v63 = vadd.f32 %v606_v21, %v605_v18  ;;  %v875_v4 = vadd.f32 %v620_v13, %v619_v20  ;;  %v623_v21 = vmul.f32 %v2576_v0, %v2576_v0 }
  0x9b   :  { %4097 = vst [vmem:[#allocation95_spill] sm:$0xff] %v2594_v12  ;;  %v622_v46 = vmul.f32 %v2573_v14, %v2573_v14  ;;  %v609_v39 = vmul.f32 %v2594_v12, %v2594_v12  ;;  %v862_v9 = vsel %vm303_vm0, %v611_v62, 0.0  ;;  %v624_v20 = vmul.f32 %v2615_v10, %v2615_v10 }
  0x9c   :  { %4101 = vst [vmem:[#allocation99_spill] sm:$0xff] %v2626_v19  ;;  %v858_v18 = vadd.f32 %v857_v63, %v607_v30  ;;  %v876_v37 = vadd.f32 %v875_v4, %v621_v35  ;;  %v2641_v13 = vsub.f32 %v2179_v44, %v464_v40  ;;  %v2644_v12 = vsub.f32 %v2186_v49, %v464_v40 }
  0x9d   :  { %v626_v63 = vmul.f32 %v2626_v19, %v2626_v19  ;;  %v627_v30 = vmul.f32 %v2629_v29, %v2629_v29  ;;  %v880_v10 = vsel %vm303_vm0, %v625_v17, 0.0  ;;  %v2654_v4 = vsub.f32 %v2201_v59, %v464_v40 }
  0x9e   :  { %v859_v1 = vadd.f32 %v858_v18, %v608_v2  ;;  %v877_v62 = vadd.f32 %v876_v37, %v622_v46  ;;  %v370_v2 = vpop.xlane.xlu1 %369  ;;  %v2659_v49 = vsub.f32 %v2220_v23, %v464_v40  ;;  %v2662_v18 = vsub.f32 %v2203_v60, %v464_v40 }
  0x9f   :  { %v884_v46 = vadd.f32 %v627_v30, %v626_v63  ;;  %v629_v37 = vmul.f32 %v2644_v12, %v2644_v12 }
  0xa0   :  { %v860_v35 = vadd.f32 %v859_v1, %v609_v39  ;;  %v878_v19 = vadd.f32 %v877_v62, %v623_v21  ;;  %v630_v39 = vmul.f32 %v2654_v4, %v2654_v4 }
  0xa1   :  { %1541 = vperm.xlu1 %1962, %v168_v57   ;;  %v352_v57 = vpop.xlane.xlu2 %351 }
  0xa2   :  { %v466_v15 = vmul.f32 0.0012755102, %v352_v57  ;;  %v610_v57 = vmul.f32 %v2604_v43, %v2604_v43  ;;  %v2650_v43 = vmul.f32 0.0012755102, %v316_v47  ;;  %v628_v47 = vmul.f32 %v2641_v13, %v2641_v13 }
  0xa3   :  { %v879_v40 = vadd.f32 %v878_v19, %v624_v20 }
  0xa4   :  { %v2667_v17 = vsub.f32 %v2146_v25, %v466_v15  ;;  %v861_v59 = vadd.f32 %v860_v35, %v610_v57  ;;  %v2672_v1 = vsub.f32 %v2148_v26, %v466_v15  ;;  %v2675_v23 = vsub.f32 %v2150_v27, %v466_v15 }
  0xa5   :  { %v885_v21 = vadd.f32 %v884_v46, %v628_v47  ;;  %v631_v57 = vmul.f32 %v2659_v49, %v2659_v49  ;;  %v2685_v63 = vsub.f32 %v2176_v42, %v466_v15  ;;  %v2688_v26 = vsub.f32 %v2191_v52, %v466_v15 }
  0xa6   :  { %v863_v25 = vadd.f32 %v862_v9, %v861_v59  ;;  %v881_v27 = vadd.f32 %v880_v10, %v879_v40  ;;  %v640_v19 = vmul.f32 %v2667_v17, %v2667_v17  ;;  %v641_v20 = vmul.f32 %v2672_v1, %v2672_v1 }
  0xa7   :  { %4102 = vst [vmem:[#allocation100_spill] sm:$0xff] %v2688_v26  ;;  %v886_v30 = vadd.f32 %v885_v21, %v629_v37  ;;  %v632_v9 = vmul.f32 %v2662_v18, %v2662_v18  ;;  %v2699_v42 = vsub.f32 %v2184_v48, %v466_v15  ;;  %v642_v52 = vmul.f32 %v2675_v23, %v2675_v23 }
  0xa8   :  { %v361_v60 = vpop.xlane.xlu0 %360  ;;  %v902_v46 = vadd.f32 %v641_v20, %v640_v19  ;;  %v2709_v59 = vsub.f32 %v2188_v50, %v2650_v43  ;;  %v2713_v48 = vsub.f32 %v2195_v55, %v2650_v43  ;;  %v644_v40 = vmul.f32 %v2685_v63, %v2685_v63 }
  0xa9   :  { %v379_v38 = vpop.xlane.xlu2 %378  ;;  %4103 = vst [vmem:[#allocation101_spill] sm:$0xff] %v2699_v42  ;;  %v467_v10 = vmul.f32 0.0012755102, %v361_v60  ;;  %v887_v35 = vadd.f32 %v886_v30, %v630_v39  ;;  %v2723_v21 = vsub.f32 %v2205_v61, %v2650_v43  ;;  %v889_v50 = vsel %vm303_vm0, %v632_v9, 0.0 }
  0xaa   :  { %v2656_v44 = vmul.f32 0.0012755102, %v379_v38  ;;  %v2680_v38 = vsub.f32 %v2165_v36, %v466_v15  ;;  %v2694_v36 = vmul.f32 0.0012755102, %v370_v2  ;;  %v646_v2 = vmul.f32 %v2688_v26, %v2688_v26  ;;  %4104 = vst [vmem:[#allocation102_spill] sm:$0xff] %v2709_v59 }
  0xab   :  { %4105 = vst [vmem:[#allocation103_spill] sm:$0xff] %v2713_v48  ;;  %v2717_v15 = vsub.f32 %v2197_v56, %v2650_v43  ;;  %v888_v60 = vadd.f32 %v887_v35, %v631_v57  ;;  %v903_v39 = vadd.f32 %v902_v46, %v642_v52  ;;  %v645_v55 = vmul.f32 %v2699_v42, %v2699_v42  ;;  %v4110_v46 = vld [vmem:[#allocation19_spill] sm:$0xff] }
  0xac   :  { %v643_v47 = vmul.f32 %v2680_v38, %v2680_v38  ;;  %4107 = vst [vmem:[#allocation105_spill] sm:$0xff] %v2723_v21  ;;  %v612_v56 = vmul.f32 %v2709_v59, %v2709_v59  ;;  %v613_v19 = vmul.f32 %v2713_v48, %v2713_v48  ;;  %v907_v35 = vsel %vm303_vm0, %v646_v2, 0.0  ;;  %v4118_v2 = vld [vmem:[#allocation27_spill] sm:$0xff] }
  0xad   :  { %4106 = vst [vmem:[#allocation104_spill] sm:$0xff] %v2717_v15  ;;  %v890_v57 = vadd.f32 %v889_v50, %v888_v60  ;;  %v614_v61 = vmul.f32 %v2717_v15, %v2717_v15  ;;  %v4116_v15 = vld [vmem:[#allocation26_spill] sm:$0xff]  ;;  %v2760_v26 = vsub.f32 %v4118_v2, %v467_v10 }
  0xae   :  { %v904_v30 = vadd.f32 %v903_v39, %v643_v47  ;;  %v615_v47 = vmul.f32 %v2723_v21, %v2723_v21  ;;  %v866_v60 = vadd.f32 %v613_v19, %v612_v56  ;;  %v4112_v39 = vld [vmem:[#allocation24_spill] sm:$0xff]  ;;  %v2757_v48 = vsub.f32 %v4116_v15, %v467_v10 }
  0xaf   :  { %v397_v37 = vpop.xlane.xlu1 %396  ;;  %v2750_v50 = vsub.f32 %v4112_v39, %v467_v10  ;;  %4119 = vst [vmem:[#allocation27_spill] sm:$0xff] %v2760_v26  ;;  %v4122_v39 = vld [vmem:[#allocation35_spill] sm:$0xff] }
  0xb0   :  { %v2740_v9 = vmul.f32 0.0012755102, %v397_v37  ;;  %v905_v59 = vadd.f32 %v904_v30, %v644_v40  ;;  %4117 = vst [vmem:[#allocation26_spill] sm:$0xff] %v2757_v48  ;;  %v648_v2 = vmul.f32 %v2757_v48, %v2757_v48 }
  0xb1   :  { %v406_v62 = vpop.xlane.xlu2 %405  ;;  %4113 = vst [vmem:[#allocation24_spill] sm:$0xff] %v2750_v50  ;;  %v647_v15 = vmul.f32 %v2750_v50, %v2750_v50 }
  0xb2   :  { %v2738_v20 = vmul.f32 0.0012755102, %v406_v62  ;;  %v4114_v62 = vld [vmem:[#allocation15_spill] sm:$0xff]  ;;  %v906_v56 = vadd.f32 %v905_v59, %v645_v55  ;;  %v4124_v59 = vld [vmem:[#allocation40_spill] sm:$0xff] }
  0xb3   :  { %v2754_v37 = vsub.f32 %v4114_v62, %v2650_v43  ;;  %v2772_v62 = vsub.f32 %v4122_v39, %v467_v10  ;;  %v2779_v55 = vsub.f32 %v4124_v59, %v467_v10  ;;  %v4130_v59 = vld [vmem:[#allocation12_spill] sm:$0xff] }
  0xb5   :  { %4115 = vst [vmem:[#allocation15_spill] sm:$0xff] %v2754_v37  ;;  %v617_v39 = vmul.f32 %v2754_v37, %v2754_v37 }
  0xb6   :  { %864 = vadd.xlane.f32.xlu0 %v863_v25  ;;  %v4108_v25 = vld [vmem:[#allocation14_spill] sm:$0xff]  ;;  %4123 = vst [vmem:[#allocation35_spill] sm:$0xff] %v2772_v62 }
  0xb7   :  { %4125 = vst [vmem:[#allocation40_spill] sm:$0xff] %v2779_v55 }
  0xbe   :  { %v388_v52 = vpop.xlane.xlu0 %387  ;;  %891 = vadd.xlane.f32.xlu0 %v890_v57  ;;  %v867_v57 = vadd.f32 %v866_v60, %v614_v61  ;;  %v649_v61 = vmul.f32 %v2760_v26, %v2760_v26 }
  0xbf   :  { %882 = vadd.xlane.f32.xlu2 %v881_v27  ;;  %v2730_v27 = vsub.f32 %v4108_v25, %v2650_v43  ;;  %v2745_v25 = vsub.f32 %v4110_v46, %v2650_v43  ;;  %v4120_v46 = vld [vmem:[#allocation30_spill] sm:$0xff]  ;;  %v2765_v30 = vmul.f32 0.0012755102, %v388_v52 }
  0xc0   :  { %v2763_v40 = vsub.f32 %v4120_v46, %v467_v10  ;;  %v908_v46 = vadd.f32 %v907_v35, %v906_v56  ;;  %v868_v21 = vadd.f32 %v867_v57, %v615_v47  ;;  %v911_v47 = vadd.f32 %v648_v2, %v647_v15  ;;  %v4128_v56 = vld [vmem:[#allocation11_spill] sm:$0xff] }
  0xc1   :  { %4109 = vst [vmem:[#allocation14_spill] sm:$0xff] %v2730_v27  ;;  %v616_v19 = vmul.f32 %v2730_v27, %v2730_v27  ;;  %v618_v43 = vmul.f32 %v2745_v25, %v2745_v25  ;;  %v2794_v57 = vsub.f32 %v4128_v56, %v2656_v44  ;;  %v653_v2 = vmul.f32 %v2779_v55, %v2779_v55  ;;  %v4135_v56 = vld [vmem:[#allocation20_spill] sm:$0xff]  ;;  %v4137_v55 = vld [vmem:[#allocation22_spill] sm:$0xff] }
  0xc2   :  { %4111 = vst [vmem:[#allocation19_spill] sm:$0xff] %v2745_v25  ;;  %v4126_v25 = vld [vmem:[#allocation39_spill] sm:$0xff]  ;;  %v650_v48 = vmul.f32 %v2763_v40, %v2763_v40 }
  0xc3   :  { %4121 = vst [vmem:[#allocation30_spill] sm:$0xff] %v2763_v40  ;;  %v2788_v27 = vsub.f32 %v4126_v25, %v467_v10  ;;  %v869_v35 = vadd.f32 %v868_v21, %v616_v19  ;;  %v871_v50 = vsel %vm303_vm0, %v618_v43, 0.0  ;;  %v651_v10 = vmul.f32 %v2772_v62, %v2772_v62  ;;  %v4132_v25 = vld [vmem:[#allocation13_spill] sm:$0xff]  ;;  %v4134_v21 = vld [vmem:[#allocation16_spill] sm:$0xff] }
  0xc4   :  { %4129 = vst [vmem:[#allocation11_spill] sm:$0xff] %v2794_v57  ;;  %v2805_v40 = vsub.f32 %v4132_v25, %v2656_v44  ;;  %v2809_v19 = vsub.f32 %v4134_v21, %v2656_v44  ;;  %v4136_v62 = vld [vmem:[#allocation25_spill] sm:$0xff]  ;;  %v661_v25 = vmul.f32 %v2794_v57, %v2794_v57 }
  0xc5   :  { %4127 = vst [vmem:[#allocation39_spill] sm:$0xff] %v2788_v27  ;;  %v870_v15 = vadd.f32 %v869_v35, %v617_v39  ;;  %v2819_v37 = vsub.f32 %v4136_v62, %v2656_v44  ;;  %v2833_v62 = vsub.f32 %v4137_v55, %v2656_v44 }
  0xc6   :  { %4133 = vst [vmem:[#allocation13_spill] sm:$0xff] %v2805_v40  ;;  %v663_v39 = vmul.f32 %v2805_v40, %v2805_v40  ;;  %v664_v57 = vmul.f32 %v2809_v19, %v2809_v19 }
  0xc7   :  { %909 = vadd.xlane.f32.xlu2 %v908_v46  ;;  %v912_v46 = vadd.f32 %v911_v47, %v649_v61  ;;  %v872_v61 = vadd.f32 %v871_v50, %v870_v15  ;;  %v652_v47 = vmul.f32 %v2788_v27, %v2788_v27  ;;  %v916_v50 = vsel %vm303_vm0, %v653_v2, 0.0 }
  0xc8   :  { %v634_v2 = vmul.f32 %v2559_v32, %v2559_v32 }
  0xc9   :  { %v433_v52 = vpop.xlane.xlu2 %432 }
  0xca   :  { %v2783_v60 = vmul.f32 0.0012755102, %v433_v52  ;;  %v2798_v52 = vsub.f32 %v4130_v59, %v2656_v44  ;;  %v2815_v59 = vsub.f32 %v4135_v56, %v2656_v44  ;;  %v913_v56 = vadd.f32 %v912_v46, %v650_v48  ;;  %v4138_v44 = vld [vmem:[#allocation8_spill] sm:$0xff]  ;;  %v4140_v46 = vld [vmem:[#allocation10_spill] sm:$0xff] }
  0xcb   :  { %v424_v26 = vpop.xlane.xlu1 %423  ;;  %v415_v43 = vpop.xlane.xlu0 %414  ;;  %873 = vadd.xlane.f32.xlu1 %v872_v61  ;;  %v2846_v55 = vsub.f32 %v4138_v44, %v2545_v53  ;;  %v2850_v27 = vsub.f32 %v4140_v46, %v2545_v53  ;;  %v636_v44 = vmul.f32 %v2567_v5, %v2567_v5  ;;  %v4144_v46 = vld [vmem:[#allocation44_spill] sm:$0xff] }
  0xcc   :  { %4131 = vst [vmem:[#allocation12_spill] sm:$0xff] %v2798_v52  ;;  %v662_v21 = vmul.f32 %v2798_v52, %v2798_v52  ;;  %v2827_v35 = vmul.f32 0.0012755102, %v424_v26  ;;  %v667_v52 = vmul.f32 %v2819_v37, %v2819_v37  ;;  %v2839_v40 = vmul.f32 0.0012755102, %v415_v43 }
  0xcd   :  { %v914_v26 = vadd.f32 %v913_v56, %v651_v10  ;;  %v665_v48 = vmul.f32 %v2815_v59, %v2815_v59  ;;  %4139 = vst [vmem:[#allocation16_spill] sm:$0xff] %v2846_v55  ;;  %v4142_v10 = vld [vmem:[#allocation9_spill] sm:$0xff] }
  0xce   :  { %v929_v42 = vadd.f32 %v662_v21, %v661_v25  ;;  %4141 = vst [vmem:[#allocation20_spill] sm:$0xff] %v2850_v27  ;;  %v633_v25 = vmul.f32 %v2555_v8, %v2555_v8  ;;  %v2856_v21 = vsub.f32 %v4142_v10, %v2545_v53  ;;  %v934_v56 = vsel %vm303_vm0, %v667_v52, 0.0  ;;  %v4148_v52 = vld [vmem:[#allocation47_spill] sm:$0xff] }
  0xcf   :  { %v915_v43 = vadd.f32 %v914_v26, %v652_v47  ;;  %v639_v53 = vmul.f32 %v2850_v27, %v2850_v27  ;;  %v2871_v10 = vsub.f32 %v4144_v46, %v2765_v30  ;;  %v2881_v5 = vsub.f32 %v4148_v52, %v2765_v30 }
  0xd0   :  { %v930_v15 = vadd.f32 %v929_v42, %v663_v39  ;;  %4143 = vst [vmem:[#allocation25_spill] sm:$0xff] %v2856_v21  ;;  %v635_v42 = vmul.f32 %v2563_v11, %v2563_v11  ;;  %v666_v39 = vmul.f32 %v2833_v62, %v2833_v62  ;;  %v893_v26 = vadd.f32 %v634_v2, %v633_v25 }
  0xd1   :  { %v917_v47 = vadd.f32 %v916_v50, %v915_v43  ;;  %4145 = vst [vmem:[#allocation22_spill] sm:$0xff] %v2871_v10  ;;  %v637_v11 = vmul.f32 %v2846_v55, %v2846_v55  ;;  %v638_v50 = vmul.f32 %v2856_v21, %v2856_v21  ;;  %v4150_v43 = vld [vmem:[#allocation50_spill] sm:$0xff] }
  0xd2   :  { %v931_v61 = vadd.f32 %v930_v15, %v664_v57  ;;  %v4146_v57 = vld [vmem:[#allocation46_spill] sm:$0xff]  ;;  %4149 = vst [vmem:[#allocation10_spill] sm:$0xff] %v2881_v5  ;;  %v894_v25 = vadd.f32 %v893_v26, %v635_v42  ;;  %v2887_v2 = vsub.f32 %v4150_v43, %v2765_v30  ;;  %v898_v26 = vsel %vm303_vm0, %v639_v53, 0.0  ;;  %v4156_v43 = vld [vmem:[#allocation60_spill] sm:$0xff] }
  0xd3   :  { %v2877_v15 = vsub.f32 %v4146_v57, %v2765_v30  ;;  %918 = vadd.xlane.f32.xlu0 %v917_v47  ;;  %v4154_v57 = vld [vmem:[#allocation61_spill] sm:$0xff]  ;;  %v668_v47 = vmul.f32 %v2871_v10, %v2871_v10  ;;  %v2904_v21 = vsub.f32 %v4156_v43, %v2765_v30  ;;  %v4159_v53 = vld [vmem:[#allocation32_spill] sm:$0xff] }
  0xd4   :  { %v932_v32 = vadd.f32 %v931_v61, %v665_v48  ;;  %4151 = vst [vmem:[#allocation9_spill] sm:$0xff] %v2887_v2  ;;  %v4152_v48 = vld [vmem:[#allocation56_spill] sm:$0xff]  ;;  %v2895_v27 = vsub.f32 %v4154_v57, %v2765_v30  ;;  %v895_v42 = vadd.f32 %v894_v25, %v636_v44  ;;  %v4158_v44 = vld [vmem:[#allocation31_spill] sm:$0xff]  ;;  %v4160_v43 = vld [vmem:[#allocation33_spill] sm:$0xff] }
  0xd5   :  { %4147 = vst [vmem:[#allocation8_spill] sm:$0xff] %v2877_v15  ;;  %v2891_v61 = vsub.f32 %v4152_v48, %v2765_v30  ;;  %v669_v52 = vmul.f32 %v2877_v15, %v2877_v15  ;;  %v671_v48 = vmul.f32 %v2887_v2, %v2887_v2  ;;  %v2914_v25 = vsub.f32 %v4158_v44, %v2738_v20 }
  0xd6   :  { %v933_v46 = vadd.f32 %v932_v32, %v666_v39  ;;  %4155 = vst [vmem:[#allocation46_spill] sm:$0xff] %v2895_v27  ;;  %v670_v32 = vmul.f32 %v2881_v5, %v2881_v5  ;;  %v896_v55 = vadd.f32 %v895_v42, %v637_v11  ;;  %v2918_v30 = vsub.f32 %v4159_v53, %v2738_v20  ;;  %v4166_v53 = vld [vmem:[#allocation45_spill] sm:$0xff] }
  0xd7   :  { %4153 = vst [vmem:[#allocation44_spill] sm:$0xff] %v2891_v61  ;;  %v672_v57 = vmul.f32 %v2891_v61, %v2891_v61  ;;  %v938_v10 = vadd.f32 %v669_v52, %v668_v47  ;;  %v2922_v5 = vsub.f32 %v4160_v43, %v2738_v20  ;;  %v4162_v47 = vld [vmem:[#allocation36_spill] sm:$0xff]  ;;  %v4164_v52 = vld [vmem:[#allocation42_spill] sm:$0xff]  ;;  %v2936_v61 = vsub.f32 %v4166_v53, %v2738_v20 }
  0xd8   :  { %4157 = vst [vmem:[#allocation47_spill] sm:$0xff] %v2904_v21  ;;  %v935_v39 = vadd.f32 %v934_v56, %v933_v46  ;;  %v674_v56 = vmul.f32 %v2895_v27, %v2895_v27  ;;  %v2928_v11 = vsub.f32 %v4162_v47, %v2738_v20  ;;  %v2932_v42 = vsub.f32 %v4164_v52, %v2738_v20  ;;  %v4168_v43 = vld [vmem:[#allocation48_spill] sm:$0xff] }
  0xd9   :  { %4161 = vst [vmem:[#allocation50_spill] sm:$0xff] %v2922_v5  ;;  %v939_v46 = vadd.f32 %v938_v10, %v670_v32  ;;  %v897_v44 = vadd.f32 %v896_v55, %v638_v50  ;;  %v682_v10 = vmul.f32 %v2914_v25, %v2914_v25  ;;  %v460_v32 = vpop.xlane.xlu2 %459  ;;  %v673_v47 = vmul.f32 %v2904_v21, %v2904_v21  ;;  %v4170_v21 = vld [vmem:[#allocation17_spill] sm:$0xff] }
  0xda   :  { %936 = vadd.xlane.f32.xlu2 %v935_v39  ;;  %4163 = vst [vmem:[#allocation56_spill] sm:$0xff] %v2928_v11  ;;  %v2940_v39 = vsub.f32 %v4168_v43, %v2738_v20  ;;  %v683_v52 = vmul.f32 %v2918_v30, %v2918_v30  ;;  %v684_v55 = vmul.f32 %v2922_v5, %v2922_v5  ;;  %v2950_v50 = vmul.f32 0.0012755102, %v460_v32 }
  0xdb   :  { %4165 = vst [vmem:[#allocation61_spill] sm:$0xff] %v2932_v42  ;;  %v940_v27 = vadd.f32 %v939_v46, %v671_v48  ;;  %v899_v53 = vadd.f32 %v898_v26, %v897_v44  ;;  %v685_v20 = vmul.f32 %v2928_v11, %v2928_v11  ;;  %v2958_v48 = vsub.f32 %v4170_v21, %v2694_v36  ;;  %v4172_v46 = vld [vmem:[#allocation18_spill] sm:$0xff] }
  0xdc   :  { %4167 = vst [vmem:[#allocation60_spill] sm:$0xff] %v2936_v61  ;;  %v688_v43 = vmul.f32 %v2940_v39, %v2940_v39  ;;  %v956_v15 = vadd.f32 %v683_v52, %v682_v10  ;;  %v2962_v8 = vsub.f32 %v4172_v46, %v2694_v36  ;;  %v943_v32 = vsel %vm303_vm0, %v674_v56, 0.0  ;;  %v4176_v52 = vld [vmem:[#allocation23_spill] sm:$0xff] }
  0xdd   :  { %4169 = vst [vmem:[#allocation31_spill] sm:$0xff] %v2940_v39  ;;  %v941_v2 = vadd.f32 %v940_v27, %v672_v57  ;;  %900 = vadd.xlane.f32.xlu1 %v899_v53  ;;  %v686_v26 = vmul.f32 %v2932_v42, %v2932_v42  ;;  %v687_v44 = vmul.f32 %v2936_v61, %v2936_v61  ;;  %v4174_v27 = vld [vmem:[#allocation21_spill] sm:$0xff]  ;;  %v4180_v42 = vld [vmem:[#allocation28_spill] sm:$0xff] }
  0xde   :  { %4171 = vst [vmem:[#allocation32_spill] sm:$0xff] %v2958_v48  ;;  %v2971_v57 = vsub.f32 %v4174_v27, %v2694_v36  ;;  %v957_v21 = vadd.f32 %v956_v15, %v684_v55  ;;  %v2975_v39 = vsub.f32 %v4176_v52, %v2694_v36  ;;  %v4178_v53 = vld [vmem:[#allocation29_spill] sm:$0xff]  ;;  %v961_v56 = vsel %vm303_vm0, %v688_v43, 0.0  ;;  %v4182_v55 = vld [vmem:[#allocation34_spill] sm:$0xff] }
  0xdf   :  { %4173 = vst [vmem:[#allocation33_spill] sm:$0xff] %v2962_v8  ;;  %v942_v10 = vadd.f32 %v941_v2, %v673_v47  ;;  %v2979_v46 = vsub.f32 %v4178_v53, %v2694_v36  ;;  %v2984_v11 = vsub.f32 %v4180_v42, %v2694_v36  ;;  %v654_v27 = vmul.f32 %v2958_v48, %v2958_v48  ;;  %v4184_v61 = vld [vmem:[#allocation65_spill] sm:$0xff]  ;;  %v4186_v48 = vld [vmem:[#allocation67_spill] sm:$0xff] }
  0xe0   :  { %4175 = vst [vmem:[#allocation36_spill] sm:$0xff] %v2971_v57  ;;  %v655_v15 = vmul.f32 %v2962_v8, %v2962_v8  ;;  %v958_v47 = vadd.f32 %v957_v21, %v685_v20  ;;  %v2992_v52 = vsub.f32 %v4182_v55, %v2694_v36  ;;  %v656_v53 = vmul.f32 %v2971_v57, %v2971_v57 }
  0xe1   :  { %4177 = vst [vmem:[#allocation42_spill] sm:$0xff] %v2975_v39  ;;  %v944_v2 = vadd.f32 %v943_v32, %v942_v10  ;;  %v660_v43 = vmul.f32 %v2979_v46, %v2979_v46  ;;  %v3000_v5 = vsub.f32 %v4184_v61, %v2839_v40  ;;  %v3004_v8 = vsub.f32 %v4186_v48, %v2839_v40 }
  0xe2   :  { %4179 = vst [vmem:[#allocation45_spill] sm:$0xff] %v2979_v46  ;;  %v920_v42 = vadd.f32 %v655_v15, %v654_v27  ;;  %v959_v20 = vadd.f32 %v958_v47, %v686_v26  ;;  %v657_v36 = vmul.f32 %v2975_v39, %v2975_v39  ;;  %v3010_v32 = vsub.f32 %v2396_v58, %v2839_v40  ;;  %v4200_v46 = vld [vmem:[#allocation37_spill] sm:$0xff] }
  0xe3   :  { %4181 = vst [vmem:[#allocation48_spill] sm:$0xff] %v2984_v11  ;;  %945 = vadd.xlane.f32.xlu0 %v944_v2  ;;  %v3014_v10 = vsub.f32 %v2404_v45, %v2839_v40  ;;  %v658_v61 = vmul.f32 %v2984_v11, %v2984_v11  ;;  %v3020_v48 = vsub.f32 %v2421_v24, %v2839_v40  ;;  %v925_v24 = vsel %vm303_vm0, %v660_v43, 0.0  ;;  %v4195_v43 = vld [vmem:[#allocation53_spill] sm:$0xff] }
  0xe4   :  { %4183 = vst [vmem:[#allocation17_spill] sm:$0xff] %v2992_v52  ;;  %v921_v21 = vadd.f32 %v920_v42, %v656_v53  ;;  %v3024_v26 = vsub.f32 %v2453_v33, %v2839_v40  ;;  %v960_v27 = vadd.f32 %v959_v20, %v687_v44  ;;  %v689_v58 = vmul.f32 %v3000_v5, %v3000_v5  ;;  %v4193_v42 = vld [vmem:[#allocation51_spill] sm:$0xff] }
  0xe5   :  { %4185 = vst [vmem:[#allocation18_spill] sm:$0xff] %v3000_v5  ;;  %v690_v45 = vmul.f32 %v3004_v8, %v3004_v8  ;;  %v691_v15 = vmul.f32 %v3010_v32, %v3010_v32  ;;  %v659_v2 = vmul.f32 %v2992_v52, %v2992_v52  ;;  %v3037_v33 = vsub.f32 %v2436_v22, %v2839_v40  ;;  %v4196_v22 = vld [vmem:[#allocation57_spill] sm:$0xff] }
  0xe6   :  { %4187 = vst [vmem:[#allocation21_spill] sm:$0xff] %v3004_v8  ;;  %v922_v47 = vadd.f32 %v921_v21, %v657_v36  ;;  %v962_v44 = vadd.f32 %v961_v56, %v960_v27  ;;  %v692_v55 = vmul.f32 %v3014_v10, %v3014_v10  ;;  %v3043_v20 = vsub.f32 %v4193_v42, %v2783_v60  ;;  %v4194_v8 = vld [vmem:[#allocation52_spill] sm:$0xff]  ;;  %v4197_v27 = vld [vmem:[#allocation63_spill] sm:$0xff] }
  0xe7   :  { %4188 = vst [vmem:[#allocation23_spill] sm:$0xff] %v3010_v32  ;;  %v965_v53 = vadd.f32 %v690_v45, %v689_v58  ;;  %v3047_v5 = vsub.f32 %v4194_v8, %v2783_v60  ;;  %v3051_v36 = vsub.f32 %v4195_v43, %v2783_v60  ;;  %v3055_v40 = vsub.f32 %v4196_v22, %v2783_v60  ;;  %v4198_v45 = vld [vmem:[#allocation68_spill] sm:$0xff]  ;;  %v442_v43 = vpop.xlane.xlu0 %441 }
  0xe8   :  { %4189 = vst [vmem:[#allocation29_spill] sm:$0xff] %v3014_v10  ;;  %v923_v32 = vadd.f32 %v922_v47, %v658_v61  ;;  %963 = vadd.xlane.f32.xlu2 %v962_v44  ;;  %v693_v56 = vmul.f32 %v3020_v48, %v3020_v48  ;;  %v695_v21 = vmul.f32 %v3024_v26, %v3024_v26 }
  0xe9   :  { %4190 = vst [vmem:[#allocation28_spill] sm:$0xff] %v3020_v48  ;;  %v966_v61 = vadd.f32 %v965_v53, %v691_v15  ;;  %v3063_v8 = vsub.f32 %v4197_v27, %v2783_v60  ;;  %v3067_v47 = vsub.f32 %v4198_v45, %v2783_v60  ;;  %v703_v42 = vmul.f32 %v3043_v20, %v3043_v20  ;;  %v4199_v53 = vld [vmem:[#allocation66_spill] sm:$0xff] }
  0xea   :  { %4191 = vst [vmem:[#allocation34_spill] sm:$0xff] %v3024_v26  ;;  %v924_v58 = vadd.f32 %v923_v32, %v659_v2  ;;  %v704_v44 = vmul.f32 %v3047_v5, %v3047_v5  ;;  %v694_v22 = vmul.f32 %v3037_v33, %v3037_v33  ;;  %v3077_v27 = vsub.f32 %v4199_v53, %v2783_v60 }
  0xeb   :  { %4192 = vst [vmem:[#allocation65_spill] sm:$0xff] %v3037_v33  ;;  %v967_v15 = vadd.f32 %v966_v61, %v692_v55  ;;  %v705_v32 = vmul.f32 %v3051_v36, %v3051_v36  ;;  %v706_v45 = vmul.f32 %v3055_v40, %v3055_v40  ;;  %v709_v26 = vmul.f32 %v3067_v47, %v3067_v47  ;;  %v4202_v55 = vld [vmem:[#allocation38_spill] sm:$0xff]  ;;  %v4204_v61 = vld [vmem:[#allocation41_spill] sm:$0xff] }
  0xec   :  { %v926_v2 = vadd.f32 %v925_v24, %v924_v58  ;;  %v983_v48 = vadd.f32 %v704_v44, %v703_v42  ;;  %v3087_v33 = vsub.f32 %v4200_v46, %v2740_v9  ;;  %v3091_v60 = vsub.f32 %v4202_v55, %v2740_v9  ;;  %v4206_v46 = vld [vmem:[#allocation43_spill] sm:$0xff]  ;;  %v4208_v55 = vld [vmem:[#allocation49_spill] sm:$0xff] }
  0xed   :  { %v968_v10 = vadd.f32 %v967_v15, %v693_v56  ;;  %v3095_v53 = vsub.f32 %v4204_v61, %v2740_v9  ;;  %v476_v24 = vmul.f32 0.0012755102, %v442_v43  ;;  %v970_v58 = vsel %vm303_vm0, %v695_v21, 0.0 }
  0xee   :  { %4201 = vst [vmem:[#allocation67_spill] sm:$0xff] %v3087_v33  ;;  %927 = vadd.xlane.f32.xlu1 %v926_v2  ;;  %v707_v42 = vmul.f32 %v3063_v8, %v3063_v8  ;;  %v984_v56 = vadd.f32 %v983_v48, %v705_v32  ;;  %v3102_v15 = vsub.f32 %v4206_v46, %v2740_v9  ;;  %v4210_v2 = vld [vmem:[#allocation54_spill] sm:$0xff]  ;;  %v4212_v32 = vld [vmem:[#allocation55_spill] sm:$0xff] }
  0xef   :  { %4203 = vst [vmem:[#allocation51_spill] sm:$0xff] %v3091_v60  ;;  %v969_v44 = vadd.f32 %v968_v10, %v694_v22  ;;  %v3106_v52 = vsub.f32 %v4208_v55, %v2740_v9  ;;  %v675_v61 = vmul.f32 %v3087_v33, %v3087_v33  ;;  %v708_v43 = vmul.f32 %v3077_v27, %v3077_v27 }
  0xf0   :  { %4205 = vst [vmem:[#allocation52_spill] sm:$0xff] %v3095_v53  ;;  %v985_v21 = vadd.f32 %v984_v56, %v706_v45  ;;  %v3114_v11 = vsub.f32 %v4210_v2, %v2740_v9  ;;  %v676_v10 = vmul.f32 %v3091_v60, %v3091_v60  ;;  %v988_v22 = vsel %vm303_vm0, %v709_v26, 0.0  ;;  %v4215_v56 = vld [vmem:[#allocation81_spill] sm:$0xff] }
  0xf1   :  { %4207 = vst [vmem:[#allocation53_spill] sm:$0xff] %v3102_v15  ;;  %v971_v48 = vadd.f32 %v970_v58, %v969_v44  ;;  %v3121_v46 = vsub.f32 %v4212_v32, %v2740_v9  ;;  %v677_v55 = vmul.f32 %v3095_v53, %v3095_v53  ;;  %v3126_v45 = vsub.f32 %v2449_v28, %v476_v24 }
  0xf2   :  { %4209 = vst [vmem:[#allocation57_spill] sm:$0xff] %v3106_v52  ;;  %v986_v33 = vadd.f32 %v985_v21, %v707_v42  ;;  %v947_v39 = vadd.f32 %v676_v10, %v675_v61  ;;  %v3129_v2 = vsub.f32 %v4215_v56, %v476_v24  ;;  %v678_v58 = vmul.f32 %v3102_v15, %v3102_v15 }
  0xf3   :  { %4211 = vst [vmem:[#allocation63_spill] sm:$0xff] %v3114_v11  ;;  %972 = vadd.xlane.f32.xlu0 %v971_v48  ;;  %v679_v26 = vmul.f32 %v3106_v52, %v3106_v52  ;;  %v3136_v9 = vsub.f32 %v2460_v41, %v476_v24  ;;  %v3139_v44 = vsub.f32 %v2471_v54, %v476_v24 }
  0xf4   :  { %4213 = vst [vmem:[#allocation68_spill] sm:$0xff] %v3121_v46  ;;  %v987_v42 = vadd.f32 %v986_v33, %v708_v43  ;;  %v680_v28 = vmul.f32 %v3114_v11, %v3114_v11  ;;  %v948_v61 = vadd.f32 %v947_v39, %v677_v55  ;;  %v3144_v21 = vsub.f32 %v2481_v16, %v476_v24  ;;  %v4222_v55 = vld [vmem:[#allocation70_spill] sm:$0xff] }
  0xf5   :  { %4214 = vst [vmem:[#allocation66_spill] sm:$0xff] %v3126_v45  ;;  %v3147_v10 = vsub.f32 %v2495_v3, %v476_v24  ;;  %v710_v48 = vmul.f32 %v3126_v45, %v3126_v45  ;;  %v711_v41 = vmul.f32 %v3129_v2, %v3129_v2  ;;  %v712_v54 = vmul.f32 %v3136_v9, %v3136_v9 }
  0xf6   :  { %4216 = vst [vmem:[#allocation37_spill] sm:$0xff] %v3129_v2  ;;  %v989_v33 = vadd.f32 %v988_v22, %v987_v42  ;;  %v681_v43 = vmul.f32 %v3121_v46, %v3121_v46  ;;  %v949_v39 = vadd.f32 %v948_v61, %v678_v58  ;;  %v3158_v16 = vsub.f32 %v2490_v7, %v476_v24  ;;  %v4224_v2 = vld [vmem:[#allocation71_spill] sm:$0xff]  ;;  %v4226_v7 = vld [vmem:[#allocation72_spill] sm:$0xff] }
  0xf7   :  { %4217 = vst [vmem:[#allocation38_spill] sm:$0xff] %v3136_v9  ;;  %v713_v3 = vmul.f32 %v3139_v44, %v3139_v44  ;;  %v992_v32 = vadd.f32 %v711_v41, %v710_v48  ;;  %v3164_v56 = vsub.f32 %v4222_v55, %v2950_v50  ;;  %v3168_v45 = vsub.f32 %v4224_v2, %v2950_v50  ;;  %v4228_v42 = vld [vmem:[#allocation75_spill] sm:$0xff] }
  0xf8   :  { %4218 = vst [vmem:[#allocation41_spill] sm:$0xff] %v3139_v44  ;;  %990 = vadd.xlane.f32.xlu2 %v989_v33  ;;  %v950_v22 = vadd.f32 %v949_v39, %v679_v26  ;;  %v714_v58 = vmul.f32 %v3144_v21, %v3144_v21  ;;  %v3174_v24 = vsub.f32 %v4226_v7, %v2950_v50  ;;  %v4230_v2 = vld [vmem:[#allocation79_spill] sm:$0xff]  ;;  %v451_v33 = vpop.xlane.xlu1 %450  ;;  %v4234_v44 = vld [vmem:[#allocation58_spill] sm:$0xff]  ;;  %v2078_v11 = vmov 0  }
  0xf9   :  { %4219 = vst [vmem:[#allocation43_spill] sm:$0xff] %v3144_v21  ;;  %v3178_v61 = vsub.f32 %v4228_v42, %v2950_v50  ;;  %v716_v48 = vmul.f32 %v3147_v10, %v3147_v10  ;;  %v993_v41 = vadd.f32 %v992_v32, %v712_v54  ;;  %v3184_v55 = vsub.f32 %v4230_v2, %v2950_v50 }
  0xfa   :  { %4220 = vst [vmem:[#allocation49_spill] sm:$0xff] %v3147_v10  ;;  %v3188_v26 = vsub.f32 %v2475_v34, %v2950_v50  ;;  %v951_v39 = vadd.f32 %v950_v22, %v680_v28  ;;  %v724_v7 = vmul.f32 %v3164_v56, %v3164_v56  ;;  %v725_v42 = vmul.f32 %v3168_v45, %v3168_v45 }
  0xfb   :  { %4221 = vst [vmem:[#allocation54_spill] sm:$0xff] %v3158_v16  ;;  %v726_v10 = vmul.f32 %v3174_v24, %v3174_v24  ;;  %v952_v54 = vsel %vm303_vm0, %v681_v43, 0.0  ;;  %v715_v32 = vmul.f32 %v3158_v16, %v3158_v16  ;;  %v994_v2 = vadd.f32 %v993_v41, %v713_v3  ;;  %v4236_v43 = vld [vmem:[#allocation59_spill] sm:$0xff]  ;;  %v4238_v3 = vld [vmem:[#allocation62_spill] sm:$0xff]  ;;  %1965 = vset.pattern.permute.xlu0 %v2078_v11 }
  0xfc   :  { %4223 = vst [vmem:[#allocation55_spill] sm:$0xff] %v3164_v56  ;;  %v3201_v34 = vsub.f32 %v2467_v51, %v2950_v50  ;;  %v953_v28 = vadd.f32 %v952_v54, %v951_v39  ;;  %v727_v22 = vmul.f32 %v3178_v61, %v3178_v61  ;;  %v1010_v21 = vadd.f32 %v725_v42, %v724_v7  ;;  %v4240_v7 = vld [vmem:[#allocation64_spill] sm:$0xff] }
  0xfd   :  { %4225 = vst [vmem:[#allocation81_spill] sm:$0xff] %v3168_v45  ;;  %v3207_v9 = vsub.f32 %v4234_v44, %v2827_v35  ;;  %v995_v45 = vadd.f32 %v994_v2, %v714_v58  ;;  %v3211_v56 = vsub.f32 %v4236_v43, %v2827_v35  ;;  %v3215_v41 = vsub.f32 %v4238_v3, %v2827_v35  ;;  %v4242_v43 = vld [vmem:[#allocation69_spill] sm:$0xff] }
  0xfe   :  { %4227 = vst [vmem:[#allocation70_spill] sm:$0xff] %v3174_v24  ;;  %v477_v24 = vmul.f32 0.0012755102, %v451_v33  ;;  %954 = vadd.xlane.f32.xlu1 %v953_v28  ;;  %v997_v51 = vsel %vm303_vm0, %v716_v48, 0.0  ;;  %v728_v50 = vmul.f32 %v3184_v55, %v3184_v55  ;;  %v730_v44 = vmul.f32 %v3188_v26, %v3188_v26  ;;  %v3222_v33 = vpop.permute.xlu2 %1481  ;;  %1967 = vset.pattern.permute.xlu2 %v2078_v11 }
  0xff   :  { %4229 = vst [vmem:[#allocation71_spill] sm:$0xff] %v3178_v61  ;;  %v1011_v39 = vadd.f32 %v1010_v21, %v726_v10  ;;  %v996_v58 = vadd.f32 %v995_v45, %v715_v32  ;;  %v3226_v42 = vsub.f32 %v4240_v7, %v2827_v35  ;;  %v696_v54 = vmul.f32 %v3207_v9, %v3207_v9  ;;  %v4244_v45 = vld [vmem:[#allocation73_spill] sm:$0xff]  ;;  %v4252_v61 = vld [vmem:[#allocation78_spill] sm:$0xff] }
 0x100   :  { %4231 = vst [vmem:[#allocation72_spill] sm:$0xff] %v3184_v55  ;;  %v697_v48 = vmul.f32 %v3211_v56, %v3211_v56  ;;  %v729_v2 = vmul.f32 %v3201_v34, %v3201_v34  ;;  %v3236_v21 = vsub.f32 %v4242_v43, %v2827_v35  ;;  %v3240_v32 = vsub.f32 %v4244_v45, %v2827_v35 }
 0x101   :  { %4232 = vst [vmem:[#allocation75_spill] sm:$0xff] %v3188_v26  ;;  %v1012_v28 = vadd.f32 %v1011_v39, %v727_v22  ;;  %v998_v10 = vadd.f32 %v997_v51, %v996_v58  ;;  %v698_v3 = vmul.f32 %v3215_v41, %v3215_v41  ;;  %v4246_v26 = vld [vmem:[#allocation74_spill] sm:$0xff]  ;;  %v4250_v39 = vld [vmem:[#allocation77_spill] sm:$0xff]  ;;  %v1015_v51 = vsel %vm303_vm0, %v730_v44, 0.0  ;;  %1966 = vset.pattern.permute.xlu1 %v2078_v11 }
 0x102   :  { %4233 = vst [vmem:[#allocation79_spill] sm:$0xff] %v3201_v34  ;;  %v974_v7 = vadd.f32 %v697_v48, %v696_v54  ;;  %v3246_v55 = vsub.f32 %v4246_v26, %v2827_v35  ;;  %v4248_v34 = vld [vmem:[#allocation76_spill] sm:$0xff]  ;;  %v3252_v43 = vsub.f32 %v4250_v39, %v477_v24  ;;  %v699_v58 = vmul.f32 %v3226_v42, %v3226_v42 }
 0x103   :  { %4235 = vst [vmem:[#allocation58_spill] sm:$0xff] %v3207_v9  ;;  %v1013_v16 = vadd.f32 %v1012_v28, %v728_v50  ;;  %v3249_v22 = vsub.f32 %v4248_v34, %v477_v24  ;;  %999 = vadd.xlane.f32.xlu0 %v998_v10  ;;  %v3258_v54 = vsub.f32 %v4252_v61, %v477_v24  ;;  %v4254_v48 = vld [vmem:[#allocation80_spill] sm:$0xff]  ;;  %v3273_v61 = vpop.permute.xlu1 %1471 }
 0x104   :  { %4237 = vst [vmem:[#allocation59_spill] sm:$0xff] %v3211_v56  ;;  %v975_v45 = vadd.f32 %v974_v7, %v698_v3  ;;  %v700_v26 = vmul.f32 %v3236_v21, %v3236_v21  ;;  %v3265_v28 = vsub.f32 %v4254_v48, %v477_v24  ;;  %v718_v44 = vmul.f32 %v3252_v43, %v3252_v43  ;;  %v4256_v7 = vld [vmem:[#allocation82_spill] sm:$0xff]  ;;  %v3280_v48 = vpop.permute.xlu0 %1476 }
 0x105   :  { %4239 = vst [vmem:[#allocation62_spill] sm:$0xff] %v3215_v41  ;;  %v1014_v50 = vadd.f32 %v1013_v16, %v729_v2  ;;  %v717_v35 = vmul.f32 %v3249_v22, %v3249_v22  ;;  %v701_v3 = vmul.f32 %v3240_v32, %v3240_v32  ;;  %v702_v16 = vmul.f32 %v3246_v55, %v3246_v55 }
 0x106   :  { %4241 = vst [vmem:[#allocation64_spill] sm:$0xff] %v3226_v42  ;;  %v976_v34 = vadd.f32 %v975_v45, %v699_v58  ;;  %v3276_v39 = vsub.f32 %v4256_v7, %v477_v24  ;;  %v719_v58 = vmul.f32 %v3258_v54, %v3258_v54  ;;  %v4259_v7 = vld [vmem:[#allocation83_spill] sm:$0xff] }
 0x107   :  { %4243 = vst [vmem:[#allocation69_spill] sm:$0xff] %v3236_v21  ;;  %v1016_v10 = vadd.f32 %v1015_v51, %v1014_v50  ;;  %v1001_v45 = vadd.f32 %v718_v44, %v717_v35  ;;  %v3282_v51 = vpop.permute.xlu2 %1491 }
 0x108   :  { %4245 = vst [vmem:[#allocation73_spill] sm:$0xff] %v3240_v32  ;;  %v977_v2 = vadd.f32 %v976_v34, %v700_v26  ;;  %v979_v34 = vsel %vm303_vm0, %v702_v16, 0.0  ;;  %v721_v35 = vmul.f32 %v3276_v39, %v3276_v39 }
 0x109   :  { %4247 = vst [vmem:[#allocation74_spill] sm:$0xff] %v3246_v55  ;;  %1017 = vadd.xlane.f32.xlu2 %v1016_v10  ;;  %v1002_v26 = vadd.f32 %v1001_v45, %v719_v58  ;;  %v3291_v55 = vsub.f32 %v4259_v7, %v477_v24 }
 0x10a   :  { %4249 = vst [vmem:[#allocation76_spill] sm:$0xff] %v3249_v22  ;;  %v978_v50 = vadd.f32 %v977_v2, %v701_v3  ;;  %v720_v22 = vmul.f32 %v3265_v28, %v3265_v28 }
 0x10b   :  { %4251 = vst [vmem:[#allocation77_spill] sm:$0xff] %v3252_v43  ;;  %v3285_v43 = vsub.f32 %v2478_v31, %v477_v24  ;;  %v723_v3 = vmul.f32 %v3291_v55, %v3291_v55  ;;  %v3299_v58 = vpop.permute.xlu1 %1486 }
 0x10c   :  { %4253 = vst [vmem:[#allocation78_spill] sm:$0xff] %v3258_v54  ;;  %v980_v54 = vadd.f32 %v979_v34, %v978_v50  ;;  %v1003_v44 = vadd.f32 %v1002_v26, %v720_v22  ;;  %v3301_v16 = vpop.permute.xlu0 %1501 }
 0x10d   :  { %4255 = vst [vmem:[#allocation80_spill] sm:$0xff] %v3265_v28  ;;  %v722_v10 = vmul.f32 %v3285_v43, %v3285_v43  ;;  %v1006_v24 = vsel %vm303_vm0, %v723_v3, 0.0 }
 0x10e   :  { %4257 = vst [vmem:[#allocation82_spill] sm:$0xff] %v3276_v39  ;;  %981 = vadd.xlane.f32.xlu1 %v980_v54  ;;  %v1004_v31 = vadd.f32 %v1003_v44, %v721_v35 }
 0x10f   :  { %4258 = vst [vmem:[#allocation106_spill] sm:$0xff] %v3285_v43  ;;  %v3304_v45 = vpop.permute.xlu2 %1506 }
 0x110   :  { %4260 = vst [vmem:[#allocation83_spill] sm:$0xff] %v3291_v55  ;;  %v1005_v2 = vadd.f32 %v1004_v31, %v722_v10 }
 0x111   :  { %4261 = vst [vmem:[#allocation107_spill] sm:$0xff] %v3304_v45 }
 0x112   :  { %v1007_v50 = vadd.f32 %v1006_v24, %v1005_v2 }
 0x113   :  { %v3306_v22 = vpop.permute.xlu1 %1496 }
 0x114   :  { %v3308_v54 = vpop.permute.xlu0 %1516 }
 0x115   :  { %4262 = vst [vmem:[#allocation108_spill] sm:$0xff] %v3308_v54 }
 0x116   :  { %1008 = vadd.xlane.f32.xlu1 %v1007_v50 }
 0x117   :  { %v3310_v26 = vpop.permute.xlu2 %1521 }
 0x118   :  { %4263 = vst [vmem:[#allocation109_spill] sm:$0xff] %v3310_v26 }
 0x11b   :  { %v3312_v34 = vpop.permute.xlu1 %1511 }
 0x11c   :  { %v3314_v7 = vpop.permute.xlu0 %1531 }
 0x11d   :  { %4264 = vst [vmem:[#allocation110_spill] sm:$0xff] %v3314_v7 }
 0x11f   :  { %v3316_v35 = vpop.permute.xlu2 %1536 }
 0x120   :  { %4265 = vst [vmem:[#allocation111_spill] sm:$0xff] %v3316_v35 }
 0x123   :  { %v3318_v10 = vpop.permute.xlu1 %1526 }
 0x129   :  { %v865_v44 = vpop.xlane.xlu0 %864 }
 0x12a   :  { %v1019_v31 = vmul.f32 0.0012755102, %v865_v44 }
 0x12b   :  { %v3320_v43 = vpop.permute.xlu1 %1541 }
 0x12c   :  { %v1037_v2 = vadd.f32 0.001, %v1019_v31 }
 0x12e   :  { %1971 = vrsqrt.f32 %v1037_v2  ;;  %vm1061_vm2 = vweird.f32 %v1037_v2 }
 0x131   :  { %v892_v39 = vpop.xlane.xlu0 %891 }
 0x132   :  { %v883_v3 = vpop.xlane.xlu2 %882  ;;  %v1022_v42 = vmul.f32 0.0012755102, %v892_v39  ;;  %v2007_v39 = vld [vmem:[%s3826_s1] sm:$0xff] }
 0x133   :  { %v1021_v55 = vmul.f32 0.0012755102, %v883_v3 }
 0x134   :  { %v1972_v50 = vpop.eup %1971  ;;  %v3322_v7 = vadd.f32 0.001, %v1022_v42 }
 0x135   :  { %v1039_v24 = vadd.f32 0.001, %v1021_v55  ;;  %v1056_v28 = vmul.f32 %v1972_v50, %v1037_v2  ;;  %vm1062_vm1 = vweird.f32 %v1972_v50 }
 0x136   :  { %vm1063_vm3 = vmor %vm1061_vm2, %vm1062_vm1  ;;  %vm1091_vm8 = vweird.f32 %v3322_v7 }
 0x137   :  { %1973 = vrsqrt.f32 %v1039_v24  ;;  %v1057_v21 = vmul.f32 %v1972_v50, %v1056_v28  ;;  %vm1081_vm5 = vweird.f32 %v1039_v24 }
 0x138   :  { %1975 = vrsqrt.f32 %v3322_v7 }
 0x139   :  { %v1058_v9 = vmul.f32 0.5, %v1057_v21 }
 0x13a   :  { %v910_v41 = vpop.xlane.xlu2 %909 }
 0x13b   :  { %v1024_v56 = vmul.f32 0.0012755102, %v910_v41  ;;  %v1059_v46 = vsub.f32 1.5, %v1058_v9 }
 0x13d   :  { %v1974_v32 = vpop.eup %1973  ;;  %v3324_v55 = vadd.f32 0.001, %v1024_v56  ;;  %v1060_v41 = vmul.f32 %v1972_v50, %v1059_v46 }
 0x13e   :  { %v1076_v35 = vmul.f32 %v1974_v32, %v1039_v24  ;;  %v874_v44 = vpop.xlane.xlu1 %873  ;;  %v3331_v56 = vpop.eup %1975  ;;  %vm1082_vm4 = vweird.f32 %v1974_v32  ;;  %v2008_v24 = vld [vmem:[%s3826_s1 + $0x10] sm:$0xff] }
 0x13f   :  { %v1020_v31 = vmul.f32 0.0012755102, %v874_v44  ;;  %1977 = vrsqrt.f32 %v3324_v55  ;;  %v1064_v21 = vsel %vm1063_vm3, %v1972_v50, %v1060_v41  ;;  %v1086_v46 = vmul.f32 %v3331_v56, %v3322_v7  ;;  %vm1083_vm6 = vmor %vm1081_vm5, %vm1082_vm4 }
 0x140   :  { %v1077_v3 = vmul.f32 %v1974_v32, %v1076_v35  ;;  %v1235_v35 = vmul.f32 %v2007_v39, %v1064_v21  ;;  %vm1092_vm7 = vweird.f32 %v3331_v56  ;;  %vm1111_vm10 = vweird.f32 %v3324_v55 }
 0x141   :  { %v3327_v26 = vadd.f32 0.001, %v1020_v31  ;;  %v1087_v39 = vmul.f32 %v3331_v56, %v1086_v46  ;;  %vm1093_vm9 = vmor %vm1091_vm8, %vm1092_vm7 }
 0x142   :  { %v1078_v28 = vmul.f32 0.5, %v1077_v3  ;;  %1255 = vperm.xlu0 %1965, %v1235_v35  }
 0x143   :  { %1979 = vrsqrt.f32 %v3327_v26  ;;  %v1088_v46 = vmul.f32 0.5, %v1087_v39  ;;  %vm1071_vm14 = vweird.f32 %v3327_v26 }
 0x144   :  { %v1079_v9 = vsub.f32 1.5, %v1078_v28 }
 0x145   :  { %v3336_v44 = vpop.eup %1977 }
 0x146   :  { %v919_v42 = vpop.xlane.xlu0 %918  ;;  %v1080_v31 = vmul.f32 %v1974_v32, %v1079_v9  ;;  %v1106_v41 = vmul.f32 %v3336_v44, %v3324_v55  ;;  %vm1112_vm11 = vweird.f32 %v3336_v44 }
 0x147   :  { %v1025_v2 = vmul.f32 0.0012755102, %v919_v42  ;;  %vm3392_vm13 = vmor %vm1111_vm10, %vm1112_vm11 }
 0x148   :  { %v1084_v21 = vsel %vm1083_vm6, %v1974_v32, %v1080_v31 }
 0x149   :  { %v3340_v28 = vpop.eup %1979  ;;  %v3347_v52 = vadd.f32 0.001, %v1025_v2  ;;  %v1237_v9 = vmul.f32 %v2008_v24, %v1084_v21 }
 0x14a   :  { %v1066_v35 = vmul.f32 %v3340_v28, %v3327_v26  ;;  %vm1072_vm12 = vweird.f32 %v3340_v28 }
 0x14b   :  { %1265 = vperm.xlu2 %1967, %v1237_v9   ;;  %v1089_v9 = vsub.f32 1.5, %v1088_v46  ;;  %vm1073_vm15 = vmor %vm1071_vm14, %vm1072_vm12  ;;  %vm1121_vm10 = vweird.f32 %v3347_v52 }
 0x14c   :  { %v1067_v2 = vmul.f32 %v3340_v28, %v1066_v35 }
 0x14d   :  { %v937_v11 = vpop.xlane.xlu2 %936 }
 0x14e   :  { %v1027_v3 = vmul.f32 0.0012755102, %v937_v11 }
 0x150   :  { %v3342_v50 = vadd.f32 0.001, %v1027_v3  ;;  %v901_v42 = vpop.xlane.xlu1 %900  ;;  %v1107_v3 = vmul.f32 %v3336_v44, %v1106_v41  ;;  %v1068_v41 = vmul.f32 0.5, %v1067_v2  ;;  %v1090_v2 = vmul.f32 %v3331_v56, %v1089_v9 }
 0x151   :  { %v1023_v11 = vmul.f32 0.0012755102, %v901_v42 }
 0x152   :  { %1981 = vrsqrt.f32 %v3342_v50  ;;  %v1108_v24 = vmul.f32 0.5, %v1107_v3  ;;  %v1094_v54 = vsel %vm1093_vm9, %v3331_v56, %v1090_v2  ;;  %vm1141_vm1 = vweird.f32 %v3342_v50 }
 0x153   :  { %v3356_v32 = vadd.f32 0.001, %v1023_v11  ;;  %1983 = vrsqrt.f32 %v3347_v52 }
 0x154   :  { %v1109_v35 = vsub.f32 1.5, %v1108_v24 }
 0x155   :  { %1985 = vrsqrt.f32 %v3356_v32  ;;  %vm1101_vm5 = vweird.f32 %v3356_v32 }
 0x156   :  { %v946_v31 = vpop.xlane.xlu0 %945  ;;  %v1110_v45 = vmul.f32 %v3336_v44, %v1109_v35 }
 0x157   :  { %v1028_v21 = vmul.f32 0.0012755102, %v946_v31 }
 0x158   :  { %v3361_v15 = vpop.eup %1981 }
 0x159   :  { %v1136_v42 = vmul.f32 %v3361_v15, %v3342_v50  ;;  %v3365_v53 = vadd.f32 0.001, %v1028_v21  ;;  %v3367_v11 = vpop.eup %1983  ;;  %v1069_v21 = vsub.f32 1.5, %v1068_v41  ;;  %vm1142_vm2 = vweird.f32 %v3361_v15 }
 0x15a   :  { %v1116_v7 = vmul.f32 %v3367_v11, %v3347_v52  ;;  %vm3428_vm4 = vmor %vm1141_vm1, %vm1142_vm2  ;;  %vm1122_vm7 = vweird.f32 %v3367_v11 }
 0x15b   :  { %v3370_v39 = vpop.eup %1985  ;;  %v1137_v60 = vmul.f32 %v3361_v15, %v1136_v42  ;;  %v964_v31 = vpop.xlane.xlu2 %963  ;;  %1987 = vrsqrt.f32 %v3365_v53  ;;  %vm3460_vm11 = vmor %vm1121_vm10, %vm1122_vm7  ;;  %vm1151_vm2 = vweird.f32 %v3365_v53 }
 0x15c   :  { %v1096_v3 = vmul.f32 %v3370_v39, %v3356_v32  ;;  %v1030_v46 = vmul.f32 0.0012755102, %v964_v31  ;;  %v2009_v31 = vld [vmem:[%s3826_s1 + $0x18] sm:$0xff]  ;;  %vm1102_vm3 = vweird.f32 %v3370_v39 }
 0x15d   :  { %v1238_v9 = vmul.f32 %v2009_v31, %v1094_v54  ;;  %v1138_v55 = vmul.f32 0.5, %v1137_v60  ;;  %v1117_v54 = vmul.f32 %v3367_v11, %v1116_v7  ;;  %v1070_v60 = vmul.f32 %v3340_v28, %v1069_v21  ;;  %v2010_v21 = vld [vmem:[%s3826_s1 + $0x8] sm:$0xff]  ;;  %vm1103_vm6 = vmor %vm1101_vm5, %vm1102_vm3 }
 0x15e   :  { %v1097_v24 = vmul.f32 %v3370_v39, %v1096_v3  ;;  %v3383_v42 = vadd.f32 0.001, %v1030_v46 }
 0x15f   :  { %1270 = vperm.xlu2 %1967, %v1238_v9   ;;  %v1139_v31 = vsub.f32 1.5, %v1138_v55  ;;  %v1074_v35 = vsel %vm1073_vm15, %v3340_v28, %v1070_v60  ;;  %v1118_v28 = vmul.f32 0.5, %v1117_v54  ;;  %v2011_v55 = vld [vmem:[%s3826_s1 + $0x28] sm:$0xff] }
 0x160   :  { %1989 = vrsqrt.f32 %v3383_v42  ;;  %v1098_v46 = vmul.f32 0.5, %v1097_v24  ;;  %v1236_v24 = vmul.f32 %v2010_v21, %v1074_v35  ;;  %vm1171_vm8 = vweird.f32 %v3383_v42 }
 0x161   :  { %v928_v41 = vpop.xlane.xlu1 %927  ;;  %v3396_v56 = vpop.eup %1987  ;;  %v1140_v35 = vmul.f32 %v3361_v15, %v1139_v31  ;;  %v1119_v21 = vsub.f32 1.5, %v1118_v28 }
 0x162   :  { %v1026_v3 = vmul.f32 0.0012755102, %v928_v41  ;;  %v1114_v41 = vsel %vm3392_vm13, %v3336_v44, %v1110_v45  ;;  %v1146_v26 = vmul.f32 %v3396_v56, %v3365_v53  ;;  %v1099_v57 = vsub.f32 1.5, %v1098_v46  ;;  %1260 = vperm.xlu1 %1966, %v1236_v24  }
 0x163   :  { %v1144_v28 = vsel %vm3428_vm4, %v3361_v15, %v1140_v35  ;;  %v2013_v15 = vld [vmem:[%s3826_s1 + $0x40] sm:$0xff]  ;;  %vm1152_vm15 = vweird.f32 %v3396_v56 }
 0x164   :  { %v3401_v2 = vadd.f32 0.001, %v1026_v3  ;;  %v1240_v3 = vmul.f32 %v2011_v55, %v1114_v41  ;;  %v1147_v46 = vmul.f32 %v3396_v56, %v1146_v26  ;;  %v1100_v24 = vmul.f32 %v3370_v39, %v1099_v57  ;;  %v2012_v57 = vld [vmem:[%s3826_s1 + $0x20] sm:$0xff]  ;;  %vm3499_vm3 = vmor %vm1151_vm2, %vm1152_vm15 }
 0x165   :  { %v1243_v35 = vmul.f32 %v2013_v15, %v1144_v28 }
 0x166   :  { %1991 = vrsqrt.f32 %v3401_v2  ;;  %v973_v7 = vpop.xlane.xlu0 %972  ;;  %v3414_v9 = vpop.eup %1989  ;;  %v1104_v26 = vsel %vm1103_vm6, %v3370_v39, %v1100_v24  ;;  %v1148_v32 = vmul.f32 0.5, %v1147_v46  ;;  %v1120_v39 = vmul.f32 %v3367_v11, %v1119_v21 }
 0x167   :  { %v1031_v45 = vmul.f32 0.0012755102, %v973_v7  ;;  %v1166_v44 = vmul.f32 %v3414_v9, %v3383_v42  ;;  %1280 = vperm.xlu2 %1967, %v1240_v3   ;;  %vm1172_vm9 = vweird.f32 %v3414_v9  ;;  %vm1131_vm14 = vweird.f32 %v3401_v2 }
 0x168   :  { %vm3467_vm12 = vmor %vm1171_vm8, %vm1172_vm9 }
 0x169   :  { %v3423_v60 = vadd.f32 0.001, %v1031_v45  ;;  %v1167_v7 = vmul.f32 %v3414_v9, %v1166_v44 }
 0x16b   :  { %1993 = vrsqrt.f32 %v3423_v60  ;;  %v991_v41 = vpop.xlane.xlu2 %990  ;;  %v1168_v50 = vmul.f32 0.5, %v1167_v7  ;;  %v1239_v7 = vmul.f32 %v2012_v57, %v1104_v26  ;;  %v1124_v57 = vsel %vm3460_vm11, %v3367_v11, %v1120_v39  ;;  %v2014_v11 = vld [vmem:[%s3826_s1 + $0x30] sm:$0xff] }
 0x16c   :  { %v1992_v31 = vpop.eup %1991  ;;  %v1033_v45 = vmul.f32 0.0012755102, %v991_v41  ;;  %v1241_v39 = vmul.f32 %v2014_v11, %v1124_v57  ;;  %vm1181_vm8 = vweird.f32 %v3423_v60 }
 0x16d   :  { %v1126_v55 = vmul.f32 %v1992_v31, %v3401_v2  ;;  %v1169_v44 = vsub.f32 1.5, %v1168_v50  ;;  %1275 = vperm.xlu1 %1966, %v1239_v7   ;;  %v1149_v50 = vsub.f32 1.5, %v1148_v32  ;;  %vm1132_vm13 = vweird.f32 %v1992_v31 }
 0x16e   :  { %v3443_v3 = vadd.f32 0.001, %v1033_v45  ;;  %vm1133_vm1 = vmor %vm1131_vm14, %vm1132_vm13  ;;  %v2016_v45 = vld [vmem:[%s3826_s1 + $0x58] sm:$0xff] }
 0x16f   :  { %v1127_v41 = vmul.f32 %v1992_v31, %v1126_v55  ;;  %v1170_v52 = vmul.f32 %v3414_v9, %v1169_v44  ;;  %1295 = vperm.xlu2 %1967, %v1243_v35   ;;  %v1150_v35 = vmul.f32 %v3396_v56, %v1149_v50 }
 0x170   :  { %1995 = vrsqrt.f32 %v3443_v3  ;;  %vm1201_vm4 = vweird.f32 %v3443_v3 }
 0x171   :  { %v3456_v54 = vpop.eup %1993  ;;  %v1128_v24 = vmul.f32 0.5, %v1127_v41  ;;  %v955_v21 = vpop.xlane.xlu1 %954  ;;  %v1174_v7 = vsel %vm3467_vm12, %v3414_v9, %v1170_v52  ;;  %v2015_v9 = vld [vmem:[%s3826_s1 + $0x38] sm:$0xff]  ;;  %v1154_v53 = vsel %vm3499_vm3, %v3396_v56, %v1150_v35 }
 0x172   :  { %v1176_v55 = vmul.f32 %v3456_v54, %v3423_v60  ;;  %v1029_v26 = vmul.f32 0.0012755102, %v955_v21  ;;  %vm1182_vm7 = vweird.f32 %v3456_v54 }
 0x173   :  { %v1129_v28 = vsub.f32 1.5, %v1128_v24  ;;  %vm3520_vm9 = vmor %vm1181_vm8, %vm1182_vm7 }
 0x174   :  { %v1177_v44 = vmul.f32 %v3456_v54, %v1176_v55  ;;  %v3477_v32 = vadd.f32 0.001, %v1029_v26  ;;  %v1246_v55 = vmul.f32 %v2016_v45, %v1174_v7 }
 0x175   :  { %v1130_v42 = vmul.f32 %v1992_v31, %v1129_v28  ;;  %1285 = vperm.xlu1 %1966, %v1241_v39   ;;  %v2019_v39 = vld [vmem:[%s3826_s1 + $0x60] sm:$0xff] }
 0x176   :  { %v1996_v41 = vpop.eup %1995  ;;  %1997 = vrsqrt.f32 %v3477_v32  ;;  %v1000_v15 = vpop.xlane.xlu0 %999  ;;  %v1178_v2 = vmul.f32 0.5, %v1177_v44  ;;  %vm1161_vm11 = vweird.f32 %v3477_v32 }
 0x177   :  { %v1196_v46 = vmul.f32 %v1996_v41, %v3443_v3  ;;  %v1034_v24 = vmul.f32 0.0012755102, %v1000_v15  ;;  %v1134_v21 = vsel %vm1133_vm1, %v1992_v31, %v1130_v42  ;;  %1310 = vperm.xlu2 %1967, %v1246_v55   ;;  %vm1202_vm5 = vweird.f32 %v1996_v41 }
 0x178   :  { %v1242_v52 = vmul.f32 %v2015_v9, %v1134_v21  ;;  %v1179_v28 = vsub.f32 1.5, %v1178_v2  ;;  %vm3508_vm6 = vmor %vm1201_vm4, %vm1202_vm5 }
 0x179   :  { %v1197_v31 = vmul.f32 %v1996_v41, %v1196_v46  ;;  %v1052_v26 = vadd.f32 0.001, %v1034_v24  ;;  %v2017_v46 = vld [vmem:[%s3826_s1 + $0x48] sm:$0xff] }
 0x17a   :  { %1290 = vperm.xlu0 %1965, %v1242_v52   ;;  %v1244_v56 = vmul.f32 %v2017_v46, %v1154_v53  ;;  %v1180_v24 = vmul.f32 %v3456_v54, %v1179_v28  ;;  %v2018_v53 = vld [vmem:[%s3826_s1 + $0x70] sm:$0xff] }
 0x17b   :  { %v1198_v57 = vmul.f32 0.5, %v1197_v31  ;;  %1999 = vrsqrt.f32 %v1052_v26  ;;  %vm1211_vm14 = vweird.f32 %v1052_v26 }
 0x17c   :  { %v1018_v44 = vpop.xlane.xlu2 %1017  ;;  %v1998_v42 = vpop.eup %1997  ;;  %v1184_v60 = vsel %vm3520_vm9, %v3456_v54, %v1180_v24  ;;  %v2020_v54 = vld [vmem:[%s3826_s1 + $0x50] sm:$0xff] }
 0x17d   :  { %v1036_v7 = vmul.f32 0.0012755102, %v1018_v44  ;;  %v1199_v15 = vsub.f32 1.5, %v1198_v57  ;;  %v1156_v11 = vmul.f32 %v1998_v42, %v3477_v32  ;;  %1300 = vperm.xlu1 %1966, %v1244_v56   ;;  %vm1162_vm10 = vweird.f32 %v1998_v42 }
 0x17e   :  { %vm1163_vm12 = vmor %vm1161_vm11, %vm1162_vm10  ;;  %v1247_v46 = vmul.f32 %v2019_v39, %v1184_v60 }
 0x17f   :  { %v1054_v3 = vadd.f32 0.001, %v1036_v7  ;;  %v1157_v35 = vmul.f32 %v1998_v42, %v1156_v11  ;;  %v1200_v2 = vmul.f32 %v1996_v41, %v1199_v15 }
 0x181   :  { %2001 = vrsqrt.f32 %v1054_v3  ;;  %v982_v21 = vpop.xlane.xlu1 %981  ;;  %v2000_v9 = vpop.eup %1999  ;;  %v1158_v52 = vmul.f32 0.5, %v1157_v35  ;;  %v1204_v55 = vsel %vm3508_vm6, %v1996_v41, %v1200_v2  ;;  %vm1231_vm1 = vweird.f32 %v1054_v3 }
 0x182   :  { %v1032_v45 = vmul.f32 0.0012755102, %v982_v21  ;;  %v1206_v31 = vmul.f32 %v2000_v9, %v1052_v26  ;;  %v1249_v28 = vmul.f32 %v2018_v53, %v1204_v55  ;;  %vm1212_vm13 = vweird.f32 %v2000_v9  ;;  %v171_v26 = vld [vmem:[%s3826_s1 + $0x88] sm:$0xff] }
 0x183   :  { %v1159_v57 = vsub.f32 1.5, %v1158_v52  ;;  %vm1213_vm15 = vmor %vm1211_vm14, %vm1212_vm13 }
 0x184   :  { %v1050_v44 = vadd.f32 0.001, %v1032_v45  ;;  %v1207_v7 = vmul.f32 %v2000_v9, %v1206_v31  ;;  %1325 = vperm.xlu2 %1967, %v1249_v28   ;;  %v169_v31 = vld [vmem:[%s3826_s1 + $0x78] sm:$0xff] }
 0x185   :  { %v1160_v41 = vmul.f32 %v1998_v42, %v1159_v57  ;;  %1315 = vperm.xlu1 %1966, %v1247_v46  }
 0x186   :  { %2003 = vrsqrt.f32 %v1050_v44  ;;  %v1208_v11 = vmul.f32 0.5, %v1207_v7  ;;  %vm1191_vm5 = vweird.f32 %v1050_v44 }
 0x187   :  { %v2002_v15 = vpop.eup %2001  ;;  %v1164_v35 = vsel %vm1163_vm12, %v1998_v42, %v1160_v41 }
 0x188   :  { %v1226_v56 = vmul.f32 %v2002_v15, %v1054_v3  ;;  %v1209_v2 = vsub.f32 1.5, %v1208_v11  ;;  %v1245_v32 = vmul.f32 %v2020_v54, %v1164_v35  ;;  %vm1232_vm2 = vweird.f32 %v2002_v15  ;;  %v2021_v54 = vld [vmem:[%s3826_s1 + $0x68] sm:$0xff] }
 0x189   :  { %v1009_v21 = vpop.xlane.xlu1 %1008  ;;  %vm1233_vm3 = vmor %vm1231_vm1, %vm1232_vm2 }
 0x18a   :  { %v1227_v24 = vmul.f32 %v2002_v15, %v1226_v56  ;;  %v1035_v52 = vmul.f32 0.0012755102, %v1009_v21  ;;  %1305 = vperm.xlu0 %1965, %v1245_v32   ;;  %v1210_v45 = vmul.f32 %v2000_v9, %v1209_v2 }
 0x18c   :  { %v2004_v55 = vpop.eup %2003  ;;  %v1228_v50 = vmul.f32 0.5, %v1227_v24  ;;  %v1053_v42 = vadd.f32 0.001, %v1035_v52  ;;  %v1214_v28 = vsel %vm1213_vm15, %v2000_v9, %v1210_v45  ;;  %v4280_v52 = vmov 1  }
 0x18d   :  { %v1186_v53 = vmul.f32 %v2004_v55, %v1050_v44  ;;  %v1250_v7 = vmul.f32 %v1214_v28, %v169_v31  ;;  %vm1192_vm4 = vweird.f32 %v2004_v55  ;;  %v170_v44 = vld [vmem:[%s3826_s1 + $0x80] sm:$0xff]  ;;  %s2079_s1 = smov [#allocation5]  }
 0x18e   :  { %v1229_v57 = vsub.f32 1.5, %v1228_v50  ;;  %2005 = vrsqrt.f32 %v1053_v42  ;;  %vm1193_vm6 = vmor %vm1191_vm5, %vm1192_vm4  ;;  %vm1221_vm8 = vweird.f32 %v1053_v42  ;;  %v4281_v28 = vld [vmem:[#allocation84_spill] sm:$0xff]  ;;  %s1941_s27 = sshll.u32 %s2079_s1, 4  ;;  %s1942_s27 = int_to_ptr.vmem [resolvable:$true] %s1941_s27 }
 0x18f   :  { %v1187_v60 = vmul.f32 %v2004_v55, %v1186_v53  ;;  %1330 = vperm.xlu1 %1966, %v1250_v7  }
 0x190   :  { %v1230_v41 = vmul.f32 %v2002_v15, %v1229_v57 }
 0x191   :  { %v1188_v11 = vmul.f32 0.5, %v1187_v60  ;;  %v4282_v60 = vld [vmem:[#allocation85_spill] sm:$0xff] }
 0x192   :  { %v1234_v3 = vsel %vm1233_vm3, %v2002_v15, %v1230_v41 }
 0x193   :  { %v1189_v39 = vsub.f32 1.5, %v1188_v11  ;;  %v1252_v46 = vmul.f32 %v1234_v3, %v171_v26  ;;  %v4283_v11 = vld [vmem:[#allocation98_spill] sm:$0xff] }
 0x194   :  { %v2006_v56 = vpop.eup %2005 }
 0x195   :  { %v1216_v35 = vmul.f32 %v2006_v56, %v1053_v42  ;;  %v1190_v9 = vmul.f32 %v2004_v55, %v1189_v39  ;;  %1340 = vperm.xlu2 %1967, %v1252_v46   ;;  %vm1222_vm7 = vweird.f32 %v2006_v56  ;;  %v4284_v39 = vld [vmem:[#allocation90_spill] sm:$0xff] }
 0x196   :  { %vm1223_vm9 = vmor %vm1221_vm8, %vm1222_vm7 }
 0x197   :  { %v1217_v2 = vmul.f32 %v2006_v56, %v1216_v35  ;;  %v1194_v21 = vsel %vm1193_vm6, %v2004_v55, %v1190_v9  ;;  %1970 = vset.pattern.permute.xlu1 %v4280_v52 }
 0x198   :  { %v1248_v32 = vmul.f32 %v2021_v54, %v1194_v21  ;;  %1556 = vperm.xlu1 %1970, %v171_v26  }
 0x199   :  { %v1218_v24 = vmul.f32 0.5, %v1217_v2 }
 0x19a   :  { %1320 = vperm.xlu0 %1965, %v1248_v32  }
 0x19b   :  { %v1219_v15 = vsub.f32 1.5, %v1218_v24 }
 0x19d   :  { %v1220_v45 = vmul.f32 %v2006_v56, %v1219_v15  ;;  %1969 = vset.pattern.permute.xlu2 %v4280_v52 }
 0x19e   :  { %1551 = vperm.xlu2 %1969, %v170_v44  }
 0x19f   :  { %v1224_v55 = vsel %vm1223_vm9, %v2006_v56, %v1220_v45  ;;  %v4285_v45 = vld [vmem:[#allocation99_spill] sm:$0xff] }
 0x1a0   :  { %v1251_v50 = vmul.f32 %v1224_v55, %v170_v44 }
 0x1a2   :  { %1335 = vperm.xlu0 %1965, %v1251_v50  }
 0x1a5   :  { %v1266_v53 = vpop.permute.xlu2 %1265 }
 0x1a6   :  { %v1357_v57 = vmul.f32 %v1266_v53, %v4281_v28  ;;  %v1358_v42 = vmul.f32 %v1266_v53, %v4282_v60  ;;  %v1359_v7 = vmul.f32 %v1266_v53, %v2570_v6  ;;  %v1360_v26 = vmul.f32 %v1266_v53, %v2573_v14 }
 0x1a7   :  { %v1361_v41 = vmul.f32 %v1266_v53, %v2576_v0  ;;  %v1362_v3 = vmul.f32 %v1266_v53, %v4283_v11  ;;  %v1363_v46 = vmul.f32 %v1266_v53, %v4284_v39 }
 0x1a8   :  { %v1573_v56 = vadd.f32 %v3222_v33, %v1357_v57  ;;  %v1574_v35 = vadd.f32 %v3222_v33, %v1358_v42  ;;  %v1576_v9 = vadd.f32 %v3222_v33, %v1360_v26 }
 0x1a9   :  { %v1577_v2 = vadd.f32 %v3222_v33, %v1361_v41  ;;  %v1578_v6 = vadd.f32 %v3222_v33, %v1362_v3  ;;  %v1579_v14 = vadd.f32 %v3222_v33, %v1363_v46 }
 0x1aa   :  { %1968 = vset.pattern.permute.xlu0 %v4280_v52  ;;  %v1699_v21 = vmax.f32 %v1573_v56, 0.0  ;;  %v1700_v0 = vmax.f32 %v1574_v35, 0.0  ;;  %v1702_v32 = vmax.f32 %v1576_v9, 0.0 }
 0x1ab   :  { %1546 = vperm.xlu0 %1968, %v169_v31   ;;  %v1575_v31 = vadd.f32 %v3222_v33, %v1359_v7  ;;  %v1703_v24 = vmax.f32 %v1577_v2, 0.0  ;;  %v1704_v52 = vmax.f32 %v1578_v6, 0.0  ;;  %v1705_v15 = vmax.f32 %v1579_v14, 0.0 }
 0x1ac   :  { %1825 = vst [vmem:[#allocation5 + $0x70] sm:$0xff] %v1699_v21 }
 0x1ad   :  { %v1701_v54 = vmax.f32 %v1575_v31, 0.0  ;;  %1826 = vst [vmem:[#allocation5 + $0x78] sm:$0xff] %v1700_v0  ;;  %v4286_v31 = vld [vmem:[#allocation91_spill] sm:$0xff]  ;;  %v4287_v0 = vld [vmem:[#allocation101_spill] sm:$0xff] }
 0x1ae   :  { %1828 = vst [vmem:[#allocation5 + $0x88] sm:$0xff] %v1702_v32  ;;  %v4288_v32 = vld [vmem:[#allocation100_spill] sm:$0xff] }
 0x1af   :  { %1827 = vst [vmem:[#allocation5 + $0x80] sm:$0xff] %v1701_v54 }
 0x1b0   :  { %1829 = vst [vmem:[#allocation5 + $0x90] sm:$0xff] %v1703_v24 }
 0x1b1   :  { %1830 = vst [vmem:[#allocation5 + $0x98] sm:$0xff] %v1704_v52  ;;  %v4289_v52 = vld [vmem:[#allocation92_spill] sm:$0xff] }
 0x1b2   :  { %1831 = vst.msk [vmem:[#allocation5 + $0xa0] sm:$0xff] %vm303_vm0, %v1705_v15 }
 0x1b9   :  { %v1271_v44 = vpop.permute.xlu2 %1270 }
 0x1ba   :  { %v1364_v55 = vmul.f32 %v1271_v44, %v4285_v45  ;;  %v1365_v33 = vmul.f32 %v1271_v44, %v2629_v29  ;;  %v1366_v50 = vmul.f32 %v1271_v44, %v2641_v13  ;;  %v1367_v53 = vmul.f32 %v1271_v44, %v2644_v12  ;;  %v4290_v45 = vld [vmem:[#allocation93_spill] sm:$0xff] }
 0x1bb   :  { %v1368_v28 = vmul.f32 %v1271_v44, %v2654_v4  ;;  %v1369_v57 = vmul.f32 %v1271_v44, %v2659_v49  ;;  %v1370_v60 = vmul.f32 %v1271_v44, %v2662_v18  ;;  %v1256_v49 = vpop.permute.xlu0 %1255 }
 0x1bc   :  { %v1580_v42 = vadd.f32 %v3299_v58, %v1364_v55  ;;  %v1581_v7 = vadd.f32 %v3299_v58, %v1365_v33  ;;  %v1582_v26 = vadd.f32 %v3299_v58, %v1366_v50  ;;  %v1583_v41 = vadd.f32 %v3299_v58, %v1367_v53  ;;  %v4291_v33 = vld [vmem:[#allocation94_spill] sm:$0xff] }
 0x1bd   :  { %v1584_v29 = vadd.f32 %v3299_v58, %v1368_v28  ;;  %v1585_v13 = vadd.f32 %v3299_v58, %v1369_v57  ;;  %v1586_v12 = vadd.f32 %v3299_v58, %v1370_v60  ;;  %v1343_v9 = vmul.f32 %v1256_v49, %v4286_v31 }
 0x1be   :  { %v1706_v11 = vmax.f32 %v1580_v42, 0.0  ;;  %v1707_v4 = vmax.f32 %v1581_v7, 0.0  ;;  %v1708_v3 = vmax.f32 %v1582_v26, 0.0  ;;  %v1709_v39 = vmax.f32 %v1583_v41, 0.0  ;;  %v4292_v7 = vld [vmem:[#allocation95_spill] sm:$0xff] }
 0x1bf   :  { %v1710_v18 = vmax.f32 %v1584_v29, 0.0  ;;  %v1711_v46 = vmax.f32 %v1585_v13, 0.0  ;;  %v1712_v56 = vmax.f32 %v1586_v12, 0.0  ;;  %v1344_v15 = vmul.f32 %v1256_v49, %v4289_v52  ;;  %v4293_v13 = vld [vmem:[#allocation97_spill] sm:$0xff] }
 0x1c0   :  { %1832 = vst [vmem:[#allocation5 + $0xa8] sm:$0xff] %v1706_v11  ;;  %v1345_v55 = vmul.f32 %v1256_v49, %v4290_v45  ;;  %v1346_v50 = vmul.f32 %v1256_v49, %v4291_v33  ;;  %v1347_v26 = vmul.f32 %v1256_v49, %v4292_v7  ;;  %v1559_v41 = vadd.f32 %v3273_v61, %v1343_v9  ;;  %v4299_v7 = vld [vmem:[#allocation56_spill] sm:$0xff] }
 0x1c1   :  { %1833 = vst [vmem:[#allocation5 + $0xb0] sm:$0xff] %v1707_v4  ;;  %v1281_v35 = vpop.permute.xlu2 %1280  ;;  %v1348_v12 = vmul.f32 %v1256_v49, %v4293_v13  ;;  %v1560_v11 = vadd.f32 %v3273_v61, %v1344_v15 }
 0x1c2   :  { %1834 = vst [vmem:[#allocation5 + $0xb8] sm:$0xff] %v1708_v3  ;;  %v1378_v2 = vmul.f32 %v1281_v35, %v2667_v17  ;;  %v1379_v6 = vmul.f32 %v1281_v35, %v2672_v1  ;;  %v1380_v58 = vmul.f32 %v1281_v35, %v2675_v23  ;;  %v1381_v14 = vmul.f32 %v1281_v35, %v2680_v38  ;;  %v4294_v3 = vld [vmem:[#allocation96_spill] sm:$0xff] }
 0x1c3   :  { %1835 = vst [vmem:[#allocation5 + $0xc0] sm:$0xff] %v1709_v39  ;;  %v1382_v21 = vmul.f32 %v1281_v35, %v2685_v63  ;;  %v1383_v54 = vmul.f32 %v1281_v35, %v4287_v0  ;;  %v1384_v24 = vmul.f32 %v1281_v35, %v4288_v32  ;;  %v1349_v39 = vmul.f32 %v1256_v49, %v4294_v3  ;;  %v4295_v35 = vld [vmem:[#allocation11_spill] sm:$0xff]  ;;  %v4297_v49 = vld [vmem:[#allocation13_spill] sm:$0xff] }
 0x1c4   :  { %1836 = vst [vmem:[#allocation5 + $0xc8] sm:$0xff] %v1710_v18  ;;  %v1594_v44 = vadd.f32 %v3306_v22, %v1378_v2  ;;  %v1595_v17 = vadd.f32 %v3306_v22, %v1379_v6  ;;  %v1596_v1 = vadd.f32 %v3306_v22, %v1380_v58  ;;  %v1597_v23 = vadd.f32 %v3306_v22, %v1381_v14  ;;  %v4296_v6 = vld [vmem:[#allocation12_spill] sm:$0xff] }
 0x1c5   :  { %1837 = vst [vmem:[#allocation5 + $0xd0] sm:$0xff] %v1711_v46  ;;  %v1598_v38 = vadd.f32 %v3306_v22, %v1382_v21  ;;  %v1599_v63 = vadd.f32 %v3306_v22, %v1383_v54  ;;  %v1600_v53 = vadd.f32 %v3306_v22, %v1384_v24  ;;  %v1561_v22 = vadd.f32 %v3273_v61, %v1345_v55 }
 0x1c6   :  { %1838 = vst.msk [vmem:[#allocation5 + $0xd8] sm:$0xff] %vm303_vm0, %v1712_v56  ;;  %v1720_v28 = vmax.f32 %v1594_v44, 0.0  ;;  %v1721_v57 = vmax.f32 %v1595_v17, 0.0  ;;  %v1722_v60 = vmax.f32 %v1596_v1, 0.0  ;;  %v1723_v42 = vmax.f32 %v1597_v23, 0.0 }
 0x1c7   :  { %v1724_v29 = vmax.f32 %v1598_v38, 0.0  ;;  %v1725_v4 = vmax.f32 %v1599_v63, 0.0  ;;  %v1726_v46 = vmax.f32 %v1600_v53, 0.0  ;;  %v1562_v56 = vadd.f32 %v3273_v61, %v1346_v50 }
 0x1c8   :  { %1846 = vst [vmem:[#allocation5 + $0x118] sm:$0xff] %v1720_v28  ;;  %v1563_v9 = vadd.f32 %v3273_v61, %v1347_v26  ;;  %v1685_v2 = vmax.f32 %v1559_v41, 0.0  ;;  %v1564_v14 = vadd.f32 %v3273_v61, %v1348_v12  ;;  %v1686_v21 = vmax.f32 %v1560_v11, 0.0  ;;  %v4301_v12 = vld [vmem:[#allocation60_spill] sm:$0xff] }
 0x1c9   :  { %1847 = vst [vmem:[#allocation5 + $0x120] sm:$0xff] %v1721_v57  ;;  %v1296_v18 = vpop.permute.xlu2 %1295  ;;  %v1565_v54 = vadd.f32 %v3273_v61, %v1349_v39  ;;  %v1687_v32 = vmax.f32 %v1561_v22, 0.0  ;;  %v1688_v52 = vmax.f32 %v1562_v56, 0.0  ;;  %v4302_v39 = vld [vmem:[#allocation31_spill] sm:$0xff] }
 0x1ca   :  { %1848 = vst [vmem:[#allocation5 + $0x128] sm:$0xff] %v1722_v60  ;;  %v1399_v31 = vmul.f32 %v1296_v18, %v4295_v35  ;;  %v1400_v58 = vmul.f32 %v1296_v18, %v4296_v6  ;;  %v1401_v0 = vmul.f32 %v1296_v18, %v4297_v49  ;;  %v1402_v24 = vmul.f32 %v1296_v18, %v2809_v19  ;;  %v4303_v35 = vld [vmem:[#allocation102_spill] sm:$0xff]  ;;  %v4304_v6 = vld [vmem:[#allocation103_spill] sm:$0xff]  ;;  %v4305_v49 = vld [vmem:[#allocation104_spill] sm:$0xff] }
 0x1cb   :  { %1849 = vst [vmem:[#allocation5 + $0x130] sm:$0xff] %v1723_v42  ;;  %v1403_v15 = vmul.f32 %v1296_v18, %v2815_v59  ;;  %v1689_v17 = vmax.f32 %v1563_v9, 0.0  ;;  %v1404_v1 = vmul.f32 %v1296_v18, %v2833_v62  ;;  %v1690_v38 = vmax.f32 %v1564_v14, 0.0 }
 0x1cc   :  { %1850 = vst [vmem:[#allocation5 + $0x138] sm:$0xff] %v1724_v29  ;;  %v1615_v44 = vadd.f32 %v3312_v34, %v1399_v31  ;;  %v1616_v23 = vadd.f32 %v3312_v34, %v1400_v58  ;;  %v1405_v61 = vmul.f32 %v1296_v18, %v2819_v37  ;;  %v1617_v63 = vadd.f32 %v3312_v34, %v1401_v0  ;;  %v4298_v37 = vld [vmem:[#allocation50_spill] sm:$0xff]  ;;  %v4300_v29 = vld [vmem:[#allocation61_spill] sm:$0xff] }
 0x1cd   :  { %1851 = vst [vmem:[#allocation5 + $0x140] sm:$0xff] %v1725_v4  ;;  %v1691_v19 = vmax.f32 %v1565_v54, 0.0  ;;  %v1618_v45 = vadd.f32 %v3312_v34, %v1402_v24  ;;  %v1619_v59 = vadd.f32 %v3312_v34, %v1403_v15  ;;  %v1620_v53 = vadd.f32 %v3312_v34, %v1404_v1  ;;  %v4306_v24 = vld [vmem:[#allocation105_spill] sm:$0xff] }
 0x1ce   :  { %1852 = vst.msk [vmem:[#allocation5 + $0x148] sm:$0xff] %vm303_vm0, %v1726_v46  ;;  %v1741_v33 = vmax.f32 %v1615_v44, 0.0  ;;  %v1742_v28 = vmax.f32 %v1616_v23, 0.0  ;;  %v1621_v60 = vadd.f32 %v3312_v34, %v1405_v61  ;;  %v1743_v42 = vmax.f32 %v1617_v63, 0.0  ;;  %v4307_v44 = vld [vmem:[#allocation14_spill] sm:$0xff]  ;;  %v4308_v61 = vld [vmem:[#allocation15_spill] sm:$0xff] }
 0x1cf   :  { %1811 = vst [vmem:[#allocation5] sm:$0xff] %v1685_v2  ;;  %v1744_v41 = vmax.f32 %v1618_v45, 0.0  ;;  %v1746_v3 = vmax.f32 %v1620_v53, 0.0 }
 0x1d0   :  { %1812 = vst [vmem:[#allocation5 + $0x8] sm:$0xff] %v1686_v21  ;;  %v1747_v46 = vmax.f32 %v1621_v60, 0.0 }
 0x1d1   :  { %1813 = vst [vmem:[#allocation5 + $0x10] sm:$0xff] %v1687_v32  ;;  %v1311_v55 = vpop.permute.xlu2 %1310 }
 0x1d2   :  { %1814 = vst [vmem:[#allocation5 + $0x18] sm:$0xff] %v1688_v52  ;;  %v1420_v50 = vmul.f32 %v1311_v55, %v2914_v25  ;;  %v1421_v62 = vmul.f32 %v1311_v55, %v2918_v30  ;;  %v1422_v57 = vmul.f32 %v1311_v55, %v4298_v37  ;;  %v1423_v26 = vmul.f32 %v1311_v55, %v4299_v7 }
 0x1d3   :  { %1815 = vst [vmem:[#allocation5 + $0x20] sm:$0xff] %v1689_v17  ;;  %v1424_v13 = vmul.f32 %v1311_v55, %v4300_v29  ;;  %v1745_v30 = vmax.f32 %v1619_v59, 0.0  ;;  %v1425_v11 = vmul.f32 %v1311_v55, %v4301_v12  ;;  %v1426_v34 = vmul.f32 %v1311_v55, %v4302_v39 }
 0x1d4   :  { %1816 = vst [vmem:[#allocation5 + $0x28] sm:$0xff] %v1690_v38  ;;  %v1636_v25 = vadd.f32 %v3318_v10, %v1420_v50  ;;  %v1637_v4 = vadd.f32 %v3318_v10, %v1421_v62  ;;  %v1638_v22 = vadd.f32 %v3318_v10, %v1422_v57  ;;  %v1261_v18 = vpop.permute.xlu1 %1260  ;;  %v1639_v56 = vadd.f32 %v3318_v10, %v1423_v26 }
 0x1d5   :  { %1817 = vst.msk [vmem:[#allocation5 + $0x30] sm:$0xff] %vm303_vm0, %v1691_v19  ;;  %v1350_v31 = vmul.f32 %v1261_v18, %v4303_v35  ;;  %v1640_v9 = vadd.f32 %v3318_v10, %v1424_v13  ;;  %v1351_v58 = vmul.f32 %v1261_v18, %v4304_v6  ;;  %v1641_v14 = vadd.f32 %v3318_v10, %v1425_v11 }
 0x1d6   :  { %1867 = vst [vmem:[#allocation5 + $0x1c0] sm:$0xff] %v1741_v33  ;;  %v1762_v2 = vmax.f32 %v1636_v25, 0.0  ;;  %v1763_v21 = vmax.f32 %v1637_v4, 0.0  ;;  %v1352_v0 = vmul.f32 %v1261_v18, %v4305_v49  ;;  %v1642_v54 = vadd.f32 %v3318_v10, %v1426_v34  ;;  %v4309_v10 = vld [vmem:[#allocation19_spill] sm:$0xff] }
 0x1d7   :  { %1868 = vst [vmem:[#allocation5 + $0x1c8] sm:$0xff] %v1742_v28  ;;  %v1764_v32 = vmax.f32 %v1638_v22, 0.0  ;;  %v1353_v52 = vmul.f32 %v1261_v18, %v4306_v24  ;;  %v1765_v15 = vmax.f32 %v1639_v56, 0.0  ;;  %v1354_v17 = vmul.f32 %v1261_v18, %v4307_v44  ;;  %v4311_v22 = vld [vmem:[#allocation87_spill] sm:$0xff]  ;;  %v4312_v56 = vld [vmem:[#allocation88_spill] sm:$0xff] }
 0x1d8   :  { %1869 = vst [vmem:[#allocation5 + $0x1d0] sm:$0xff] %v1743_v42  ;;  %v1566_v1 = vadd.f32 %v3280_v48, %v1350_v31  ;;  %v1766_v38 = vmax.f32 %v1640_v9, 0.0  ;;  %v1355_v63 = vmul.f32 %v1261_v18, %v4308_v61  ;;  %v1567_v19 = vadd.f32 %v3280_v48, %v1351_v58  ;;  %v4313_v9 = vld [vmem:[#allocation89_spill] sm:$0xff]  ;;  %v4314_v58 = vld [vmem:[#allocation16_spill] sm:$0xff] }
 0x1d9   :  { %1870 = vst [vmem:[#allocation5 + $0x1d8] sm:$0xff] %v1744_v41  ;;  %v1767_v45 = vmax.f32 %v1641_v14, 0.0  ;;  %v1356_v55 = vmul.f32 %v1261_v18, %v4309_v10  ;;  %v1568_v59 = vadd.f32 %v3280_v48, %v1352_v0  ;;  %v1768_v33 = vmax.f32 %v1642_v54, 0.0  ;;  %v4315_v54 = vld [vmem:[#allocation25_spill] sm:$0xff] }
 0x1da   :  { %1871 = vst [vmem:[#allocation5 + $0x1e0] sm:$0xff] %v1745_v30  ;;  %v1569_v50 = vadd.f32 %v3280_v48, %v1353_v52  ;;  %v1570_v53 = vadd.f32 %v3280_v48, %v1354_v17  ;;  %v1692_v28 = vmax.f32 %v1566_v1, 0.0  ;;  %v1571_v60 = vadd.f32 %v3280_v48, %v1355_v63 }
 0x1db   :  { %1872 = vst [vmem:[#allocation5 + $0x1e8] sm:$0xff] %v1746_v3  ;;  %v1693_v42 = vmax.f32 %v1567_v19, 0.0  ;;  %v1572_v26 = vadd.f32 %v3280_v48, %v1356_v55  ;;  %v1694_v41 = vmax.f32 %v1568_v59, 0.0  ;;  %v4310_v3 = vld [vmem:[#allocation86_spill] sm:$0xff]  ;;  %v4319_v59 = vld [vmem:[#allocation27_spill] sm:$0xff] }
 0x1dc   :  { %1873 = vst.msk [vmem:[#allocation5 + $0x1f0] sm:$0xff] %vm303_vm0, %v1747_v46  ;;  %v1696_v25 = vmax.f32 %v1570_v53, 0.0  ;;  %v4318_v19 = vld [vmem:[#allocation26_spill] sm:$0xff] }
 0x1dd   :  { %1888 = vst [vmem:[#allocation5 + $0x268] sm:$0xff] %v1762_v2  ;;  %v4320_v53 = vld [vmem:[#allocation30_spill] sm:$0xff] }
 0x1de   :  { %v1326_v23 = vpop.permute.xlu2 %1325  ;;  %1889 = vst [vmem:[#allocation5 + $0x270] sm:$0xff] %v1763_v21 }
 0x1df   :  { %1890 = vst [vmem:[#allocation5 + $0x278] sm:$0xff] %v1764_v32  ;;  %v1441_v62 = vmul.f32 %v1326_v23, %v3043_v20  ;;  %v1442_v37 = vmul.f32 %v1326_v23, %v3047_v5  ;;  %v1276_v57 = vpop.permute.xlu1 %1275  ;;  %v1443_v7 = vmul.f32 %v1326_v23, %v3051_v36  ;;  %v1444_v29 = vmul.f32 %v1326_v23, %v3055_v40 }
 0x1e0   :  { %1891 = vst [vmem:[#allocation5 + $0x280] sm:$0xff] %v1765_v15  ;;  %v1695_v20 = vmax.f32 %v1569_v50, 0.0  ;;  %v1445_v13 = vmul.f32 %v1326_v23, %v3063_v8  ;;  %v1446_v30 = vmul.f32 %v1326_v23, %v3077_v27  ;;  %v1697_v36 = vmax.f32 %v1571_v60, 0.0 }
 0x1e1   :  { %1892 = vst [vmem:[#allocation5 + $0x288] sm:$0xff] %v1766_v38  ;;  %v1657_v5 = vadd.f32 %v3320_v43, %v1441_v62  ;;  %v1658_v12 = vadd.f32 %v3320_v43, %v1442_v37  ;;  %v1447_v48 = vmul.f32 %v1326_v23, %v3067_v47  ;;  %v1659_v11 = vadd.f32 %v3320_v43, %v1443_v7  ;;  %v4317_v23 = vld [vmem:[#allocation24_spill] sm:$0xff] }
 0x1e2   :  { %1893 = vst [vmem:[#allocation5 + $0x290] sm:$0xff] %v1767_v45  ;;  %v1698_v40 = vmax.f32 %v1572_v26, 0.0  ;;  %v1660_v4 = vadd.f32 %v3320_v43, %v1444_v29  ;;  %v1371_v8 = vmul.f32 %v1276_v57, %v4310_v3  ;;  %v1661_v39 = vadd.f32 %v3320_v43, %v1445_v13 }
 0x1e3   :  { %1894 = vst.msk [vmem:[#allocation5 + $0x298] sm:$0xff] %vm303_vm0, %v1768_v33  ;;  %v1783_v34 = vmax.f32 %v1657_v5, 0.0  ;;  %v1372_v27 = vmul.f32 %v1276_v57, %v4311_v22  ;;  %v1662_v18 = vadd.f32 %v3320_v43, %v1446_v30  ;;  %v1784_v46 = vmax.f32 %v1658_v12, 0.0 }
 0x1e4   :  { %1818 = vst [vmem:[#allocation5 + $0x38] sm:$0xff] %v1692_v28  ;;  %v1373_v47 = vmul.f32 %v1276_v57, %v4312_v56  ;;  %v1663_v35 = vadd.f32 %v3320_v43, %v1447_v48  ;;  %v1785_v31 = vmax.f32 %v1659_v11, 0.0  ;;  %v1374_v2 = vmul.f32 %v1276_v57, %v4313_v9  ;;  %v4316_v43 = vld [vmem:[#allocation20_spill] sm:$0xff]  ;;  %v4329_v9 = vld [vmem:[#allocation107_spill] sm:$0xff] }
 0x1e5   :  { %1819 = vst [vmem:[#allocation5 + $0x40] sm:$0xff] %v1693_v42  ;;  %v1786_v6 = vmax.f32 %v1660_v4, 0.0  ;;  %v1375_v14 = vmul.f32 %v1276_v57, %v4314_v58  ;;  %v1587_v21 = vadd.f32 %v3282_v51, %v1371_v8  ;;  %v1787_v0 = vmax.f32 %v1661_v39, 0.0  ;;  %v4325_v4 = vld [vmem:[#allocation33_spill] sm:$0xff] }
 0x1e6   :  { %1820 = vst [vmem:[#allocation5 + $0x48] sm:$0xff] %v1694_v41  ;;  %v1376_v32 = vmul.f32 %v1276_v57, %v4315_v54  ;;  %v1588_v24 = vadd.f32 %v3282_v51, %v1372_v27  ;;  %v1788_v52 = vmax.f32 %v1662_v18, 0.0  ;;  %v1377_v15 = vmul.f32 %v1276_v57, %v4316_v43  ;;  %v4321_v57 = vld [vmem:[#allocation35_spill] sm:$0xff]  ;;  %v4332_v43 = vld [vmem:[#allocation22_spill] sm:$0xff] }
 0x1e7   :  { %1821 = vst [vmem:[#allocation5 + $0x50] sm:$0xff] %v1695_v20  ;;  %v1286_v49 = vpop.permute.xlu1 %1285  ;;  %v1589_v44 = vadd.f32 %v3282_v51, %v1373_v47  ;;  %v1789_v17 = vmax.f32 %v1663_v35, 0.0  ;;  %v1590_v1 = vadd.f32 %v3282_v51, %v1374_v2  ;;  %v1591_v61 = vadd.f32 %v3282_v51, %v1375_v14  ;;  %v4322_v41 = vld [vmem:[#allocation39_spill] sm:$0xff]  ;;  %v4328_v35 = vld [vmem:[#allocation48_spill] sm:$0xff]  ;;  %v4330_v14 = vld [vmem:[#allocation17_spill] sm:$0xff] }
 0x1e8   :  { %1822 = vst [vmem:[#allocation5 + $0x58] sm:$0xff] %v1696_v25  ;;  %v1385_v38 = vmul.f32 %v1286_v49, %v4317_v23  ;;  %v1713_v63 = vmax.f32 %v1587_v21, 0.0  ;;  %v1386_v45 = vmul.f32 %v1286_v49, %v4318_v19  ;;  %v1592_v10 = vadd.f32 %v3282_v51, %v1376_v32 }
 0x1e9   :  { %1823 = vst [vmem:[#allocation5 + $0x60] sm:$0xff] %v1697_v36  ;;  %v1714_v55 = vmax.f32 %v1588_v24, 0.0  ;;  %v1387_v33 = vmul.f32 %v1286_v49, %v4319_v59  ;;  %v1593_v50 = vadd.f32 %v3282_v51, %v1377_v15  ;;  %v1715_v62 = vmax.f32 %v1589_v44, 0.0  ;;  %v4323_v51 = vld [vmem:[#allocation40_spill] sm:$0xff] }
 0x1ea   :  { %1824 = vst.msk [vmem:[#allocation5 + $0x68] sm:$0xff] %vm303_vm0, %v1698_v40  ;;  %v1388_v28 = vmul.f32 %v1286_v49, %v4320_v53  ;;  %v1716_v37 = vmax.f32 %v1590_v1, 0.0  ;;  %v1389_v60 = vmul.f32 %v1286_v49, %v4321_v57  ;;  %v1601_v42 = vadd.f32 %v3301_v16, %v1385_v38  ;;  %v4324_v36 = vld [vmem:[#allocation32_spill] sm:$0xff] }
 0x1eb   :  { %1909 = vst [vmem:[#allocation5 + $0x310] sm:$0xff] %v1783_v34  ;;  %v1717_v26 = vmax.f32 %v1591_v61, 0.0  ;;  %v1390_v29 = vmul.f32 %v1286_v49, %v4322_v41  ;;  %v1602_v20 = vadd.f32 %v3301_v16, %v1386_v45  ;;  %v1718_v13 = vmax.f32 %v1592_v10, 0.0  ;;  %v4326_v34 = vld [vmem:[#allocation36_spill] sm:$0xff]  ;;  %v4339_v41 = vld [vmem:[#allocation46_spill] sm:$0xff] }
 0x1ec   :  { %1910 = vst [vmem:[#allocation5 + $0x318] sm:$0xff] %v1784_v46  ;;  %v1291_v7 = vpop.permute.xlu0 %1290  ;;  %v1391_v5 = vmul.f32 %v1286_v49, %v4323_v51  ;;  %v1603_v25 = vadd.f32 %v3301_v16, %v1387_v33  ;;  %v1719_v30 = vmax.f32 %v1593_v50, 0.0  ;;  %v1604_v12 = vadd.f32 %v3301_v16, %v1388_v28  ;;  %v4327_v46 = vld [vmem:[#allocation42_spill] sm:$0xff]  ;;  %v4333_v1 = vld [vmem:[#allocation8_spill] sm:$0xff] }
 0x1ed   :  { %1911 = vst [vmem:[#allocation5 + $0x320] sm:$0xff] %v1785_v31  ;;  %v1392_v48 = vmul.f32 %v1291_v7, %v4324_v36  ;;  %v1605_v11 = vadd.f32 %v3301_v16, %v1389_v60  ;;  %v1727_v40 = vmax.f32 %v1601_v42, 0.0  ;;  %v1393_v3 = vmul.f32 %v1291_v7, %v4325_v4  ;;  %v4336_v50 = vld [vmem:[#allocation44_spill] sm:$0xff]  ;;  %v4338_v60 = vld [vmem:[#allocation47_spill] sm:$0xff] }
 0x1ee   :  { %1912 = vst [vmem:[#allocation5 + $0x328] sm:$0xff] %v1786_v6  ;;  %v1606_v8 = vadd.f32 %v3301_v16, %v1390_v29  ;;  %v1728_v39 = vmax.f32 %v1602_v20, 0.0  ;;  %v1394_v22 = vmul.f32 %v1291_v7, %v4326_v34  ;;  %v1607_v27 = vadd.f32 %v3301_v16, %v1391_v5  ;;  %v4331_v16 = vld [vmem:[#allocation45_spill] sm:$0xff]  ;;  %v4337_v53 = vld [vmem:[#allocation108_spill] sm:$0xff]  ;;  %v4340_v5 = vld [vmem:[#allocation67_spill] sm:$0xff] }
 0x1ef   :  { %1913 = vst [vmem:[#allocation5 + $0x330] sm:$0xff] %v1787_v0  ;;  %v1729_v18 = vmax.f32 %v1603_v25, 0.0  ;;  %v1395_v56 = vmul.f32 %v1291_v7, %v4327_v46  ;;  %v1730_v47 = vmax.f32 %v1604_v12, 0.0  ;;  %v1396_v31 = vmul.f32 %v1291_v7, %v4328_v35  ;;  %v1301_v6 = vpop.permute.xlu1 %1300  ;;  %v4341_v36 = vld [vmem:[#allocation51_spill] sm:$0xff]  ;;  %v4342_v4 = vld [vmem:[#allocation52_spill] sm:$0xff]  ;;  %v4343_v34 = vld [vmem:[#allocation53_spill] sm:$0xff] }
 0x1f0   :  { %1914 = vst [vmem:[#allocation5 + $0x338] sm:$0xff] %v1788_v52  ;;  %v1608_v2 = vadd.f32 %v4329_v9, %v1392_v48  ;;  %v1731_v58 = vmax.f32 %v1605_v11, 0.0  ;;  %v1397_v21 = vmul.f32 %v1291_v7, %v4330_v14  ;;  %v1609_v49 = vadd.f32 %v4329_v9, %v1393_v3  ;;  %v4347_v14 = vld [vmem:[#allocation68_spill] sm:$0xff] }
 0x1f1   :  { %1915 = vst.msk [vmem:[#allocation5 + $0x340] sm:$0xff] %vm303_vm0, %v1789_v17  ;;  %v1732_v0 = vmax.f32 %v1606_v8, 0.0  ;;  %v1398_v54 = vmul.f32 %v1291_v7, %v4331_v16  ;;  %v1610_v32 = vadd.f32 %v4329_v9, %v1394_v22  ;;  %v1733_v24 = vmax.f32 %v1607_v27, 0.0 }
 0x1f2   :  { %1839 = vst [vmem:[#allocation5 + $0xe0] sm:$0xff] %v1713_v63  ;;  %v1611_v52 = vadd.f32 %v4329_v9, %v1395_v56  ;;  %v1406_v15 = vmul.f32 %v1301_v6, %v4332_v43  ;;  %v1612_v44 = vadd.f32 %v4329_v9, %v1396_v31  ;;  %v1734_v17 = vmax.f32 %v1608_v2, 0.0  ;;  %v4334_v63 = vld [vmem:[#allocation10_spill] sm:$0xff]  ;;  %v4345_v56 = vld [vmem:[#allocation109_spill] sm:$0xff] }
 0x1f3   :  { %1840 = vst [vmem:[#allocation5 + $0xe8] sm:$0xff] %v1714_v55  ;;  %v1407_v23 = vmul.f32 %v1301_v6, %v4333_v1  ;;  %v1613_v38 = vadd.f32 %v4329_v9, %v1397_v21  ;;  %v1735_v61 = vmax.f32 %v1609_v49, 0.0  ;;  %v1408_v19 = vmul.f32 %v1301_v6, %v4334_v63  ;;  %v4335_v55 = vld [vmem:[#allocation9_spill] sm:$0xff] }
 0x1f4   :  { %1841 = vst [vmem:[#allocation5 + $0xf0] sm:$0xff] %v1715_v62  ;;  %v1614_v45 = vadd.f32 %v4329_v9, %v1398_v54  ;;  %v1736_v10 = vmax.f32 %v1610_v32, 0.0  ;;  %v1409_v59 = vmul.f32 %v1301_v6, %v4335_v55  ;;  %v1737_v33 = vmax.f32 %v1611_v52, 0.0  ;;  %v4346_v9 = vld [vmem:[#allocation63_spill] sm:$0xff]  ;;  %v4348_v54 = vld [vmem:[#allocation18_spill] sm:$0xff]  ;;  %v4349_v43 = vld [vmem:[#allocation21_spill] sm:$0xff] }
 0x1f5   :  { %1842 = vst [vmem:[#allocation5 + $0xf8] sm:$0xff] %v1716_v37  ;;  %v1410_v62 = vmul.f32 %v1301_v6, %v4336_v50  ;;  %v1622_v28 = vadd.f32 %v4337_v53, %v1406_v15  ;;  %v1738_v57 = vmax.f32 %v1612_v44, 0.0  ;;  %v1411_v42 = vmul.f32 %v1301_v6, %v4338_v60  ;;  %v4352_v55 = vld [vmem:[#allocation28_spill] sm:$0xff]  ;;  %v4355_v60 = vld [vmem:[#allocation34_spill] sm:$0xff] }
 0x1f6   :  { %1843 = vst [vmem:[#allocation5 + $0x100] sm:$0xff] %v1717_v26  ;;  %v1623_v7 = vadd.f32 %v4337_v53, %v1407_v23  ;;  %v1739_v26 = vmax.f32 %v1613_v38, 0.0  ;;  %v1412_v29 = vmul.f32 %v1301_v6, %v4339_v41  ;;  %v1624_v20 = vadd.f32 %v4337_v53, %v1408_v19  ;;  %v4350_v23 = vld [vmem:[#allocation23_spill] sm:$0xff]  ;;  %v4351_v19 = vld [vmem:[#allocation29_spill] sm:$0xff] }
 0x1f7   :  { %1844 = vst [vmem:[#allocation5 + $0x108] sm:$0xff] %v1718_v13  ;;  %v1740_v13 = vmax.f32 %v1614_v45, 0.0  ;;  %v1625_v51 = vadd.f32 %v4337_v53, %v1409_v59  ;;  %v1748_v12 = vmax.f32 %v1622_v28, 0.0  ;;  %v1627_v11 = vadd.f32 %v4337_v53, %v1411_v42  ;;  %v1316_v35 = vpop.permute.xlu1 %1315 }
 0x1f8   :  { %1845 = vst.msk [vmem:[#allocation5 + $0x110] sm:$0xff] %vm303_vm0, %v1719_v30  ;;  %v1626_v30 = vadd.f32 %v4337_v53, %v1410_v62  ;;  %v1628_v8 = vadd.f32 %v4337_v53, %v1412_v29  ;;  %v1427_v32 = vmul.f32 %v1316_v35, %v4348_v54  ;;  %v1428_v15 = vmul.f32 %v1316_v35, %v4349_v43  ;;  %v4354_v53 = vld [vmem:[#allocation65_spill] sm:$0xff] }
 0x1f9   :  { %1853 = vst [vmem:[#allocation5 + $0x150] sm:$0xff] %v1727_v40  ;;  %v1749_v40 = vmax.f32 %v1623_v7, 0.0  ;;  %v1751_v27 = vmax.f32 %v1625_v51, 0.0  ;;  %v1429_v38 = vmul.f32 %v1316_v35, %v4350_v23  ;;  %v1430_v45 = vmul.f32 %v1316_v35, %v4351_v19 }
 0x1fa   :  { %1854 = vst [vmem:[#allocation5 + $0x158] sm:$0xff] %v1728_v39  ;;  %v1750_v39 = vmax.f32 %v1624_v20, 0.0  ;;  %v1752_v31 = vmax.f32 %v1626_v30, 0.0  ;;  %v1431_v59 = vmul.f32 %v1316_v35, %v4352_v55  ;;  %v1432_v28 = vmul.f32 %v1316_v35, %v4354_v53  ;;  %v4356_v20 = vld [vmem:[#allocation58_spill] sm:$0xff] }
 0x1fb   :  { %1855 = vst [vmem:[#allocation5 + $0x160] sm:$0xff] %v1729_v18  ;;  %v4344_v18 = vld [vmem:[#allocation57_spill] sm:$0xff]  ;;  %v1433_v42 = vmul.f32 %v1316_v35, %v4355_v60 }
 0x1fc   :  { %1856 = vst [vmem:[#allocation5 + $0x168] sm:$0xff] %v1730_v47  ;;  %v1306_v37 = vpop.permute.xlu0 %1305 }
 0x1fd   :  { %1857 = vst [vmem:[#allocation5 + $0x170] sm:$0xff] %v1731_v58  ;;  %v1413_v25 = vmul.f32 %v1306_v37, %v4340_v5  ;;  %v1414_v48 = vmul.f32 %v1306_v37, %v4341_v36  ;;  %v1415_v3 = vmul.f32 %v1306_v37, %v4342_v4  ;;  %v1416_v22 = vmul.f32 %v1306_v37, %v4343_v34  ;;  %v4360_v34 = vld [vmem:[#allocation69_spill] sm:$0xff] }
 0x1fe   :  { %1858 = vst [vmem:[#allocation5 + $0x178] sm:$0xff] %v1732_v0  ;;  %v1417_v46 = vmul.f32 %v1306_v37, %v4344_v18  ;;  %v1418_v2 = vmul.f32 %v1306_v37, %v4346_v9  ;;  %v1753_v58 = vmax.f32 %v1627_v11, 0.0  ;;  %v1419_v21 = vmul.f32 %v1306_v37, %v4347_v14 }
 0x1ff   :  { %1859 = vst.msk [vmem:[#allocation5 + $0x180] sm:$0xff] %vm303_vm0, %v1733_v24  ;;  %v1629_v47 = vadd.f32 %v4345_v56, %v1413_v25  ;;  %v1630_v6 = vadd.f32 %v4345_v56, %v1414_v48  ;;  %v1631_v49 = vadd.f32 %v4345_v56, %v1415_v3  ;;  %v1754_v0 = vmax.f32 %v1628_v8, 0.0  ;;  %v4357_v25 = vld [vmem:[#allocation59_spill] sm:$0xff]  ;;  %v4358_v48 = vld [vmem:[#allocation62_spill] sm:$0xff]  ;;  %v4359_v3 = vld [vmem:[#allocation64_spill] sm:$0xff] }
 0x200   :  { %1860 = vst [vmem:[#allocation5 + $0x188] sm:$0xff] %v1734_v17  ;;  %v1632_v16 = vadd.f32 %v4345_v56, %v1416_v22  ;;  %v1633_v24 = vadd.f32 %v4345_v56, %v1417_v46  ;;  %v1634_v17 = vadd.f32 %v4345_v56, %v1418_v2 }
 0x201   :  { %1861 = vst [vmem:[#allocation5 + $0x190] sm:$0xff] %v1735_v61  ;;  %v1755_v52 = vmax.f32 %v1629_v47, 0.0  ;;  %v1756_v1 = vmax.f32 %v1630_v6, 0.0  ;;  %v1635_v61 = vadd.f32 %v4345_v56, %v1419_v21  ;;  %v1757_v63 = vmax.f32 %v1631_v49, 0.0  ;;  %v4362_v47 = vld [vmem:[#allocation73_spill] sm:$0xff]  ;;  %v3771_v9 = vpop.permute.xlu1 %1330  ;;  %v4363_v6 = vld [vmem:[#allocation74_spill] sm:$0xff] }
 0x202   :  { %1862 = vst [vmem:[#allocation5 + $0x198] sm:$0xff] %v1736_v10  ;;  %v1758_v10 = vmax.f32 %v1632_v16, 0.0  ;;  %v1759_v62 = vmax.f32 %v1633_v24, 0.0 }
 0x203   :  { %1863 = vst [vmem:[#allocation5 + $0x1a0] sm:$0xff] %v1737_v33  ;;  %v4353_v33 = vld [vmem:[#allocation110_spill] sm:$0xff]  ;;  %v1761_v41 = vmax.f32 %v1635_v61, 0.0  ;;  %v4367_v61 = vld [vmem:[#allocation80_spill] sm:$0xff] }
 0x204   :  { %1864 = vst [vmem:[#allocation5 + $0x1a8] sm:$0xff] %v1738_v57  ;;  %v1643_v50 = vadd.f32 %v4353_v33, %v1427_v32  ;;  %v1644_v37 = vadd.f32 %v4353_v33, %v1428_v15  ;;  %v1760_v57 = vmax.f32 %v1634_v17, 0.0  ;;  %v1645_v7 = vadd.f32 %v4353_v33, %v1429_v38 }
 0x205   :  { %1865 = vst [vmem:[#allocation5 + $0x1b0] sm:$0xff] %v1739_v26  ;;  %v3756_v26 = vpop.permute.xlu2 %1340  ;;  %v1646_v29 = vadd.f32 %v4353_v33, %v1430_v45  ;;  %v1647_v51 = vadd.f32 %v4353_v33, %v1431_v59  ;;  %v4368_v45 = vld [vmem:[#allocation82_spill] sm:$0xff] }
 0x206   :  { %1866 = vst.msk [vmem:[#allocation5 + $0x1b8] sm:$0xff] %vm303_vm0, %v1740_v13  ;;  %v1769_v5 = vmax.f32 %v1643_v50, 0.0  ;;  %v1770_v36 = vmax.f32 %v1644_v37, 0.0  ;;  %v1771_v4 = vmax.f32 %v1645_v7, 0.0 }
 0x207   :  { %1874 = vst [vmem:[#allocation5 + $0x1f8] sm:$0xff] %v1748_v12  ;;  %v1648_v12 = vadd.f32 %v4353_v33, %v1432_v28  ;;  %v1773_v56 = vmax.f32 %v1647_v51, 0.0  ;;  %v4370_v28 = vld [vmem:[#allocation83_spill] sm:$0xff] }
 0x208   :  { %1875 = vst [vmem:[#allocation5 + $0x200] sm:$0xff] %v1749_v40  ;;  %v1649_v40 = vadd.f32 %v4353_v33, %v1433_v42  ;;  %v4369_v33 = vld [vmem:[#allocation106_spill] sm:$0xff]  ;;  %v4371_v51 = vld [vmem:[#allocation55_spill] sm:$0xff] }
 0x209   :  { %1876 = vst [vmem:[#allocation5 + $0x208] sm:$0xff] %v1750_v39  ;;  %v1772_v39 = vmax.f32 %v1646_v29, 0.0  ;;  %v1774_v2 = vmax.f32 %v1648_v12, 0.0  ;;  %v4372_v12 = vld [vmem:[#allocation81_spill] sm:$0xff] }
 0x20a   :  { %1877 = vst [vmem:[#allocation5 + $0x210] sm:$0xff] %v1751_v27  ;;  %v4361_v27 = vld [vmem:[#allocation111_spill] sm:$0xff]  ;;  %v1775_v21 = vmax.f32 %v1649_v40, 0.0  ;;  %v1557_v29 = vpop.permute.xlu1 %1556 }
 0x20b   :  { %1878 = vst [vmem:[#allocation5 + $0x218] sm:$0xff] %v1752_v31 }
 0x20c   :  { %v1321_v44 = vpop.permute.xlu0 %1320  ;;  %1879 = vst [vmem:[#allocation5 + $0x220] sm:$0xff] %v1753_v58 }
 0x20d   :  { %1880 = vst.msk [vmem:[#allocation5 + $0x228] sm:$0xff] %vm303_vm0, %v1754_v0  ;;  %v1434_v13 = vmul.f32 %v1321_v44, %v4356_v20  ;;  %v1435_v30 = vmul.f32 %v1321_v44, %v4357_v25  ;;  %v1436_v11 = vmul.f32 %v1321_v44, %v4358_v48  ;;  %v1437_v8 = vmul.f32 %v1321_v44, %v4359_v3  ;;  %v4364_v0 = vld [vmem:[#allocation76_spill] sm:$0xff]  ;;  %v1552_v24 = vpop.permute.xlu2 %1551 }
 0x20e   :  { %1881 = vst [vmem:[#allocation5 + $0x230] sm:$0xff] %v1755_v52  ;;  %v1438_v22 = vmul.f32 %v1321_v44, %v4360_v34  ;;  %v1439_v35 = vmul.f32 %v1321_v44, %v4362_v47  ;;  %v1440_v58 = vmul.f32 %v1321_v44, %v4363_v6  ;;  %v4365_v52 = vld [vmem:[#allocation77_spill] sm:$0xff]  ;;  %v4366_v44 = vld [vmem:[#allocation78_spill] sm:$0xff]  ;;  %v4376_v47 = vld [vmem:[#allocation79_spill] sm:$0xff] }
 0x20f   :  { %1882 = vst [vmem:[#allocation5 + $0x238] sm:$0xff] %v1756_v1  ;;  %v1650_v18 = vadd.f32 %v4361_v27, %v1434_v13  ;;  %v1651_v31 = vadd.f32 %v4361_v27, %v1435_v30  ;;  %v1652_v14 = vadd.f32 %v4361_v27, %v1436_v11  ;;  %v1653_v49 = vadd.f32 %v4361_v27, %v1437_v8  ;;  %v4373_v11 = vld [vmem:[#allocation70_spill] sm:$0xff]  ;;  %v4374_v8 = vld [vmem:[#allocation71_spill] sm:$0xff] }
 0x210   :  { %1883 = vst [vmem:[#allocation5 + $0x240] sm:$0xff] %v1757_v63  ;;  %v1654_v54 = vadd.f32 %v4361_v27, %v1438_v22  ;;  %v1655_v15 = vadd.f32 %v4361_v27, %v1439_v35  ;;  %v1656_v23 = vadd.f32 %v4361_v27, %v1440_v58  ;;  %v1464_v40 = vmul.f32 %v3756_v26, %v4373_v11  ;;  %v4375_v27 = vld [vmem:[#allocation72_spill] sm:$0xff] }
 0x211   :  { %1884 = vst [vmem:[#allocation5 + $0x248] sm:$0xff] %v1758_v10  ;;  %v1776_v32 = vmax.f32 %v1650_v18, 0.0  ;;  %v1777_v17 = vmax.f32 %v1651_v31, 0.0  ;;  %v1778_v38 = vmax.f32 %v1652_v14, 0.0  ;;  %v1779_v19 = vmax.f32 %v1653_v49, 0.0 }
 0x212   :  { %1885 = vst [vmem:[#allocation5 + $0x250] sm:$0xff] %v1759_v62  ;;  %v1780_v59 = vmax.f32 %v1654_v54, 0.0  ;;  %v1781_v53 = vmax.f32 %v1655_v15, 0.0  ;;  %v1782_v60 = vmax.f32 %v1656_v23, 0.0  ;;  %v1466_v18 = vmul.f32 %v3756_v26, %v4375_v27  ;;  %v4381_v23 = vld [vmem:[#allocation41_spill] sm:$0xff] }
 0x213   :  { %1886 = vst [vmem:[#allocation5 + $0x258] sm:$0xff] %v1760_v57  ;;  %v1467_v35 = vmul.f32 %v3756_v26, %v4376_v47 }
 0x214   :  { %1887 = vst.msk [vmem:[#allocation5 + $0x260] sm:$0xff] %vm303_vm0, %v1761_v41  ;;  %v1336_v46 = vpop.permute.xlu0 %1335  ;;  %v1682_v58 = vadd.f32 %v1557_v29, %v1466_v18 }
 0x215   :  { %1895 = vst [vmem:[#allocation5 + $0x2a0] sm:$0xff] %v1769_v5  ;;  %v1455_v16 = vmul.f32 %v1336_v46, %v4364_v0  ;;  %v1456_v43 = vmul.f32 %v1336_v46, %v4365_v52  ;;  %v1457_v1 = vmul.f32 %v1336_v46, %v4366_v44  ;;  %v1458_v63 = vmul.f32 %v1336_v46, %v4367_v61  ;;  %v4379_v52 = vld [vmem:[#allocation37_spill] sm:$0xff] }
 0x216   :  { %1896 = vst [vmem:[#allocation5 + $0x2a8] sm:$0xff] %v1770_v36  ;;  %v1459_v10 = vmul.f32 %v1336_v46, %v4368_v45  ;;  %v1460_v50 = vmul.f32 %v1336_v46, %v4369_v33  ;;  %v1461_v37 = vmul.f32 %v1336_v46, %v4370_v28  ;;  %v1462_v5 = vmul.f32 %v3756_v26, %v4371_v51 }
 0x217   :  { %1897 = vst [vmem:[#allocation5 + $0x2b0] sm:$0xff] %v1771_v4  ;;  %v1671_v55 = vadd.f32 %v1552_v24, %v1455_v16  ;;  %v1672_v62 = vadd.f32 %v1552_v24, %v1456_v43  ;;  %v1673_v57 = vadd.f32 %v1552_v24, %v1457_v1  ;;  %v1674_v42 = vadd.f32 %v1552_v24, %v1458_v63  ;;  %v4378_v16 = vld [vmem:[#allocation66_spill] sm:$0xff] }
 0x218   :  { %1898 = vst [vmem:[#allocation5 + $0x2b8] sm:$0xff] %v1772_v39  ;;  %v1675_v7 = vadd.f32 %v1552_v24, %v1459_v10  ;;  %v1676_v20 = vadd.f32 %v1552_v24, %v1460_v50  ;;  %v1677_v25 = vadd.f32 %v1552_v24, %v1461_v37  ;;  %v1463_v36 = vmul.f32 %v3756_v26, %v4372_v12 }
 0x219   :  { %1899 = vst [vmem:[#allocation5 + $0x2c0] sm:$0xff] %v1773_v56  ;;  %v1797_v41 = vmax.f32 %v1671_v55, 0.0  ;;  %v1798_v13 = vmax.f32 %v1672_v62, 0.0  ;;  %v1799_v30 = vmax.f32 %v1673_v57, 0.0  ;;  %v1800_v48 = vmax.f32 %v1674_v42, 0.0  ;;  %v4384_v62 = vld [vmem:[#allocation49_spill] sm:$0xff] }
 0x21a   :  { %1900 = vst [vmem:[#allocation5 + $0x2c8] sm:$0xff] %v1774_v2  ;;  %v1678_v4 = vadd.f32 %v1557_v29, %v1462_v5  ;;  %v1801_v3 = vmax.f32 %v1675_v7, 0.0  ;;  %v1465_v39 = vmul.f32 %v3756_v26, %v4374_v8  ;;  %v1679_v34 = vadd.f32 %v1557_v29, %v1463_v36  ;;  %v4377_v2 = vld [vmem:[#allocation75_spill] sm:$0xff] }
 0x21b   :  { %1901 = vst.msk [vmem:[#allocation5 + $0x2d0] sm:$0xff] %vm303_vm0, %v1775_v21  ;;  %v1802_v22 = vmax.f32 %v1676_v20, 0.0  ;;  %v1680_v46 = vadd.f32 %v1557_v29, %v1464_v40  ;;  %v1803_v56 = vmax.f32 %v1677_v25, 0.0  ;;  %v1468_v6 = vmul.f32 %v3756_v26, %v4377_v2 }
 0x21c   :  { %1902 = vst [vmem:[#allocation5 + $0x2d8] sm:$0xff] %v1776_v32  ;;  %v1681_v31 = vadd.f32 %v1557_v29, %v1465_v39  ;;  %v1804_v14 = vmax.f32 %v1678_v4, 0.0  ;;  %v1683_v49 = vadd.f32 %v1557_v29, %v1467_v35  ;;  %v1805_v0 = vmax.f32 %v1679_v34, 0.0 }
 0x21d   :  { %1903 = vst [vmem:[#allocation5 + $0x2e0] sm:$0xff] %v1777_v17  ;;  %v1547_v21 = vpop.permute.xlu0 %1546  ;;  %v1448_v54 = vmul.f32 %v3771_v9, %v4378_v16  ;;  %v1684_v32 = vadd.f32 %v1557_v29, %v1468_v6  ;;  %v1806_v24 = vmax.f32 %v1680_v46, 0.0  ;;  %v1449_v43 = vmul.f32 %v3771_v9, %v4379_v52  ;;  %v4380_v17 = vld [vmem:[#allocation38_spill] sm:$0xff] }
 0x21e   :  { %1904 = vst [vmem:[#allocation5 + $0x2e8] sm:$0xff] %v1778_v38  ;;  %v1807_v15 = vmax.f32 %v1681_v31, 0.0  ;;  %v1450_v26 = vmul.f32 %v3771_v9, %v4380_v17  ;;  %v1808_v1 = vmax.f32 %v1682_v58, 0.0  ;;  %v1451_v38 = vmul.f32 %v3771_v9, %v4381_v23 }
 0x21f   :  { %1905 = vst [vmem:[#allocation5 + $0x2f0] sm:$0xff] %v1779_v19  ;;  %v1664_v44 = vadd.f32 %v1547_v21, %v1448_v54  ;;  %v1665_v61 = vadd.f32 %v1547_v21, %v1449_v43  ;;  %v1809_v63 = vmax.f32 %v1683_v49, 0.0  ;;  %v4382_v19 = vld [vmem:[#allocation43_spill] sm:$0xff]  ;;  %v1810_v55 = vmax.f32 %v1684_v32, 0.0 }
 0x220   :  { %1906 = vst [vmem:[#allocation5 + $0x2f8] sm:$0xff] %v1780_v59  ;;  %v1452_v45 = vmul.f32 %v3771_v9, %v4382_v19  ;;  %v1666_v10 = vadd.f32 %v1547_v21, %v1450_v26  ;;  %v4383_v59 = vld [vmem:[#allocation54_spill] sm:$0xff]  ;;  %v1667_v50 = vadd.f32 %v1547_v21, %v1451_v38 }
 0x221   :  { %1907 = vst [vmem:[#allocation5 + $0x300] sm:$0xff] %v1781_v53  ;;  %v1453_v33 = vmul.f32 %v3771_v9, %v4383_v59  ;;  %v1454_v53 = vmul.f32 %v3771_v9, %v4384_v62  ;;  %v1790_v37 = vmax.f32 %v1664_v44, 0.0 }
 0x222   :  { %1908 = vst.msk [vmem:[#allocation5 + $0x308] sm:$0xff] %vm303_vm0, %v1782_v60  ;;  %v1668_v28 = vadd.f32 %v1547_v21, %v1452_v45  ;;  %v1791_v60 = vmax.f32 %v1665_v61, 0.0  ;;  %v1792_v7 = vmax.f32 %v1666_v10, 0.0 }
 0x223   :  { %1923 = vst [vmem:[#allocation5 + $0x380] sm:$0xff] %v1797_v41  ;;  %v1669_v57 = vadd.f32 %v1547_v21, %v1453_v33  ;;  %v1670_v42 = vadd.f32 %v1547_v21, %v1454_v53  ;;  %v1793_v41 = vmax.f32 %v1667_v50, 0.0 }
 0x224   :  { %1924 = vst [vmem:[#allocation5 + $0x388] sm:$0xff] %v1798_v13  ;;  %v1794_v29 = vmax.f32 %v1668_v28, 0.0 }
 0x225   :  { %1925 = vst [vmem:[#allocation5 + $0x390] sm:$0xff] %v1799_v30  ;;  %v1795_v20 = vmax.f32 %v1669_v57, 0.0  ;;  %v1796_v9 = vmax.f32 %v1670_v42, 0.0 }
 0x226   :  { %1926 = vst [vmem:[#allocation5 + $0x398] sm:$0xff] %v1800_v48 }
 0x227   :  { %1927 = vst [vmem:[#allocation5 + $0x3a0] sm:$0xff] %v1801_v3 }
 0x228   :  { %1928 = vst [vmem:[#allocation5 + $0x3a8] sm:$0xff] %v1802_v22 }
 0x229   :  { %1929 = vst.msk [vmem:[#allocation5 + $0x3b0] sm:$0xff] %vm303_vm0, %v1803_v56 }
 0x22a   :  { %1930 = vst [vmem:[#allocation5 + $0x3b8] sm:$0xff] %v1804_v14 }
 0x22b   :  { %1931 = vst [vmem:[#allocation5 + $0x3c0] sm:$0xff] %v1805_v0 }
 0x22c   :  { %1932 = vst [vmem:[#allocation5 + $0x3c8] sm:$0xff] %v1806_v24 }
 0x22d   :  { %1933 = vst [vmem:[#allocation5 + $0x3d0] sm:$0xff] %v1807_v15 }
 0x22e   :  { %1934 = vst [vmem:[#allocation5 + $0x3d8] sm:$0xff] %v1808_v1 }
 0x22f   :  { %1935 = vst [vmem:[#allocation5 + $0x3e0] sm:$0xff] %v1809_v63 }
 0x230   :  { %1936 = vst.msk [vmem:[#allocation5 + $0x3e8] sm:$0xff] %vm303_vm0, %v1810_v55 }
 0x231   :  { %1916 = vst [vmem:[#allocation5 + $0x348] sm:$0xff] %v1790_v37 }
 0x232   :  { %1917 = vst [vmem:[#allocation5 + $0x350] sm:$0xff] %v1791_v60 }
 0x233   :  { %1918 = vst [vmem:[#allocation5 + $0x358] sm:$0xff] %v1792_v7 }
 0x234   :  { %1919 = vst [vmem:[#allocation5 + $0x360] sm:$0xff] %v1793_v41 }
 0x235   :  { %1920 = vst [vmem:[#allocation5 + $0x368] sm:$0xff] %v1794_v29 }
 0x236   :  { %1921 = vst [vmem:[#allocation5 + $0x370] sm:$0xff] %v1795_v20 }
 0x237   :  { %1922 = vst.msk [vmem:[#allocation5 + $0x378] sm:$0xff] %vm303_vm0, %v1796_v9 }
 0x238   :  { %1949 = dma.vmem_to_hbm [thread:$0]  %s1942_s27, 16128, %s1944_s30, [#allocation4], %s2075_s14, %s2075_s14, %s2076_s15  }
 0x239   :  { %2072 = dma.done.wait [#allocation4], 16128  }
 0x23a   :  { %2073 = vsyncadd [#allocation4], 4294951168 }
 0x23b   :  { %1954 = vsyncpa [#allocation3], 1 }
 0x23c   :  { %1955 = vsyncpa [#allocation4], 1 }

</bundles_post_ra>
